<compile_context>
chip_gen: v6e
topology: v6e:2x2x1
jax: 0.10.0
libtpu: 0.0.40
codegen_flags: <defaults>
</compile_context>

<pallas_src>
import functools

import jax
import jax.numpy as jnp
from jax.experimental import pallas as pl
from jax.experimental.pallas import tpu as pltpu

K = 5                 # deconv kernel size
STRIDE = 2            # deconv stride
PAD = K // 2          # = 2
OUT_PAD = STRIDE - 1  # = 1 (output_padding)

# Polyphase tap tables for k=5, s=2, p=2, output_padding=1 (input pre-padded by 1):
#   even output phase uses padded rows r+{0,1,2} with kernel taps kh={4,2,0}
#   odd  output phase uses padded rows r+{1,2}   with kernel taps kh={3,1}
# Same tables hold along W.  Weights are pre-folded accordingly (see
# _fold_deconv_weight): index 0..2 = even-row taps kh=4,2,0; index 3..4 = odd-row
# taps kh=3,1; inside each folded matrix, rows are grouped by W-shift jw=0..2 and
# columns by output column phase (even | odd).


# ----------------------------- Pallas kernel --------------------------------

def _deconv_igdn_kernel(xm_ref, xtop_ref, xbot_ref, wf_ref, b2_ref, g2_ref,
                        bt2_ref, o_ref, xt_ref, lhs_ref,
                        *, tr, wi, cin, cout, apply_igdn):
    """Fused polyphase ConvTranspose2d(5,2,2,op=1) + (optional) inverse GDN.

    xm_ref  : (1, tr, wi, cin)        main rows of the (unpadded) input tile
    xtop_ref: (1, 1, wi, cin)         row just above the tile (content ignored at j==0)
    xbot_ref: (1, 1, wi, cin)         row just below the tile (content ignored at j==last)
    wf_ref  : (5, 3*cin, 2*cout)      folded weights (row tap x W-shift x col phase)
    b2_ref  : (1, 2*cout)  f32        bias duplicated over both col phases
    g2_ref  : (2*cout, 2*cout)        block-diag(gamma^T, gamma^T) (compute dtype)
    bt2_ref : (1, 2*cout)  f32        beta duplicated over both col phases
    o_ref   : (1, tr, 2, wi, 2*cout)  phase-major output (row-phase, col-phase)
    xt_ref  : VMEM (tr+2, wi+2, cin)  zero-padded input window scratch
    lhs_ref : VMEM (3, tr*wi, 3*cin)  im2col LHS slabs (one per row shift)
    """
    j = pl.program_id(1)
    last = pl.num_programs(1) - 1
    cdt = xt_ref.dtype

    # ---- assemble the zero-padded (tr+2, wi+2, cin) window in VMEM scratch ----
    xt_ref[:, 0:1, :] = jnp.zeros((tr + 2, 1, cin), cdt)            # left pad col
    xt_ref[:, wi + 1:wi + 2, :] = jnp.zeros((tr + 2, 1, cin), cdt)  # right pad col
    xt_ref[1:tr + 1, 1:wi + 1, :] = xm_ref[0].astype(cdt)           # main rows

    @pl.when(j > 0)
    def _():
        xt_ref[0:1, 1:wi + 1, :] = xtop_ref[0].astype(cdt)          # top halo row

    @pl.when(j == 0)
    def _():
        xt_ref[0:1, 1:wi + 1, :] = jnp.zeros((1, wi, cin), cdt)     # top image pad

    @pl.when(j < last)
    def _():
        xt_ref[tr + 1:tr + 2, 1:wi + 1, :] = xbot_ref[0].astype(cdt)

    @pl.when(j == last)
    def _():
        xt_ref[tr + 1:tr + 2, 1:wi + 1, :] = jnp.zeros((1, wi, cin), cdt)

    # ---- im2col along W: 3 row-shifted slabs of shape (tr*wi, 3*cin) ----
    for jh in range(3):
        for jw in range(3):
            lhs_ref[jh, :, jw * cin:(jw + 1) * cin] = (
                xt_ref[jh:jh + tr, jw:jw + wi, :].reshape(tr * wi, cin))

    def epilogue(acc):
        acc = acc + b2_ref[...]
        if apply_igdn:
            # y = x * sqrt(beta + x^2 @ gamma^T); elementwise math stays f32.
            xsq = (acc * acc).astype(g2_ref.dtype)
            norm = jnp.dot(xsq, g2_ref[...], preferred_element_type=jnp.float32)
            acc = acc * jnp.sqrt(norm + bt2_ref[...])
        return acc.reshape(tr, wi, 2 * cout).astype(o_ref.dtype)

    # even output-row phase: row taps kh = 4, 2, 0  <->  slabs 0, 1, 2
    acc = jnp.dot(lhs_ref[0], wf_ref[0], preferred_element_type=jnp.float32)
    acc = acc + jnp.dot(lhs_ref[1], wf_ref[1], preferred_element_type=jnp.float32)
    acc = acc + jnp.dot(lhs_ref[2], wf_ref[2], preferred_element_type=jnp.float32)
    o_ref[0, :, 0, :, :] = epilogue(acc)

    # odd output-row phase: row taps kh = 3, 1  <->  slabs 1, 2
    acc = jnp.dot(lhs_ref[1], wf_ref[3], preferred_element_type=jnp.float32)
    acc = acc + jnp.dot(lhs_ref[2], wf_ref[4], preferred_element_type=jnp.float32)
    o_ref[0, :, 1, :, :] = epilogue(acc)


# ------------------------------ tiling helpers -------------------------------

def _vmem_budget_bytes():
    """~75% of the per-core VMEM capacity (v5e/v6e: ~96 MiB, v7x: ~48 MiB)."""
    cap = 64 << 20
    try:
        cap = int(pltpu.get_tpu_info().vmem_capacity_bytes)
    except Exception:  # pragma: no cover - conservative fallback
        pass
    return max(32 << 20, min((cap * 3) // 4, 100 << 20))


def _tile_need_bytes(tr, *, wi, cin, cout, in_item, cdt_item, out_item):
    """Estimated VMEM footprint of one grid step (incl. double buffering)."""
    main_in = tr * wi * cin * in_item
    halo_in = 2 * wi * cin * in_item
    out_blk = tr * 2 * wi * 2 * cout * out_item
    params = (15 * cin + 2 * cout) * 2 * cout * cdt_item + 16 * cout
    xt_scr = (tr + 2) * (wi + 2) * cin * cdt_item
    lhs_scr = 9 * tr * wi * cin * cdt_item
    live_tmp = 4 * tr * wi * 2 * cout * 4          # acc / xsq / norm / y temporaries
    need = 2 * (main_in + halo_in + out_blk + params) + xt_scr + lhs_scr + live_tmp
    return int(need * 1.2) + (2 << 20)


def _pick_row_tile(h, bsz, budget, need_fn, tr_cap=64):
    """Largest divisor of h that fits the VMEM budget (>=2 tiles when bsz==1)."""
    best = 1
    for d in sorted((d for d in range(1, h + 1) if h % d == 0), reverse=True):
        if d > tr_cap:
            continue
        if bsz == 1 and h > 1 and d == h:
            continue   # keep >= 2 row tiles so both v7x TensorCores get work
        if need_fn(d) <= budget:
            best = d
            break
    return best


# ------------------------------ layer wrapper --------------------------------

def deconv_igdn_pallas(x_nhwc, wf, b2, g2, bt2, *, apply_igdn, out_dtype):
    """ConvTranspose2d(k=5,s=2,p=2,op=1) [+ fused inverse GDN] on NHWC input."""
    bsz, h, wi, cin = x_nhwc.shape
    cout = wf.shape[-1] // 2
    cdt = wf.dtype

    budget = _vmem_budget_bytes()
    need_fn = functools.partial(
        _tile_need_bytes, wi=wi, cin=cin, cout=cout,
        in_item=x_nhwc.dtype.itemsize,
        cdt_item=jnp.dtype(cdt).itemsize,
        out_item=jnp.dtype(out_dtype).itemsize)
    tr = _pick_row_tile(h, bsz, budget, need_fn)
    ntiles = h // tr

    kernel = functools.partial(_deconv_igdn_kernel, tr=tr, wi=wi, cin=cin,
                               cout=cout, apply_igdn=apply_igdn)

    out = pl.pallas_call(
        kernel,
        out_shape=jax.ShapeDtypeStruct((bsz, h, 2, wi, 2 * cout), out_dtype),
        grid=(bsz, ntiles),
        in_specs=[
            # main rows of the tile
            pl.BlockSpec((1, tr, wi, cin), lambda i, j: (i, j, 0, 0)),
            # 1-row top halo (clamped at the image top; zeroed in-kernel at j==0)
            pl.BlockSpec((1, 1, wi, cin),
                         lambda i, j: (i, jnp.maximum(j * tr - 1, 0), 0, 0)),
            # 1-row bottom halo (clamped at the image bottom; zeroed at j==last)
            pl.BlockSpec((1, 1, wi, cin),
                         lambda i, j: (i, jnp.minimum((j + 1) * tr, h - 1), 0, 0)),
            # grid-invariant params
            pl.BlockSpec((5, 3 * cin, 2 * cout), lambda i, j: (0, 0, 0)),
            pl.BlockSpec((1, 2 * cout), lambda i, j: (0, 0)),
            pl.BlockSpec((2 * cout, 2 * cout), lambda i, j: (0, 0)),
            pl.BlockSpec((1, 2 * cout), lambda i, j: (0, 0)),
        ],
        out_specs=pl.BlockSpec((1, tr, 2, wi, 2 * cout),
                               lambda i, j: (i, j, 0, 0, 0)),
        scratch_shapes=[
            pltpu.VMEM((tr + 2, wi + 2, cin), cdt),     # padded input window
            pltpu.VMEM((3, tr * wi, 3 * cin), cdt),     # im2col slabs
        ],
        compiler_params=pltpu.CompilerParams(
            dimension_semantics=("parallel", "parallel"),
            vmem_limit_bytes=budget),
    )(x_nhwc, x_nhwc, x_nhwc, wf, b2, g2, bt2)

    # (B, H, 2, W, 2*cout) is already in (b, r, a, c, b2, co) memory order:
    # the 2x pixel interleave is a free row-major reshape (no transpose, no copy).
    return out.reshape(bsz, 2 * h, 2 * wi, cout)


# --------------------------- model (params + fwd) ---------------------------

def init_params(key, N, M, out_channels):
    def deconv_init(k, cin, cout):
        kw, kb = jax.random.split(k)
        scale = 1.0 / jnp.sqrt(cin * K * K)
        wgt = scale * jax.random.normal(kw, (cin, cout, K, K), jnp.float32)
        bvec = 0.01 * jax.random.normal(kb, (cout,), jnp.float32)
        return wgt, bvec

    def gdn_init(cdim):
        beta = jnp.ones((cdim,), jnp.float32)                     # GDN init
        gamma = 0.1 * jnp.eye(cdim, dtype=jnp.float32) + 1e-3     # non-negative
        return gamma, beta

    keys = jax.random.split(key, 4)
    return {
        "d1": deconv_init(keys[0], M, N), "g1": gdn_init(N),
        "d2": deconv_init(keys[1], N, N), "g2": gdn_init(N),
        "d3": deconv_init(keys[2], N, N), "g3": gdn_init(N),
        "d4": deconv_init(keys[3], N, out_channels),
    }


def _fold_deconv_weight(w_pt, compute_dtype):
    """PyTorch (Cin,Cout,K,K) -> (5, 3*Cin, 2*Cout) polyphase/im2col-folded weights.

    Folded index 0..2 = even-row taps kh=4,2,0 (paired with row shifts jh=0,1,2);
    index 3..4 = odd-row taps kh=3,1 (row shifts jh=1,2).  Inside each matrix,
    K-dim rows are grouped by W-shift jw (0..2); N-dim columns hold the even
    column phase (kw=4,2,0) then the odd column phase (kw=-,3,1; zeros at jw=0).
    """
    cin, cout = int(w_pt.shape[0]), int(w_pt.shape[1])
    w = jnp.transpose(w_pt, (2, 3, 0, 1)).astype(jnp.float32)     # (K, K, cin, cout)
    zeros = jnp.zeros((cin, cout), jnp.float32)
    kw_even = (4, 2, 0)
    kw_odd = (None, 3, 1)
    folded = []
    for kh in (4, 2, 0, 3, 1):
        blocks = []
        for jw in range(3):
            even_blk = w[kh, kw_even[jw]]
            odd_blk = zeros if kw_odd[jw] is None else w[kh, kw_odd[jw]]
            blocks.append(jnp.concatenate([even_blk, odd_blk], axis=-1))  # (cin, 2cout)
        folded.append(jnp.concatenate(blocks, axis=0))                    # (3cin, 2cout)
    return jnp.stack(folded, axis=0).astype(compute_dtype)               # (5, 3cin, 2cout)


def prepare_params(raw, compute_dtype=jnp.bfloat16):
    """One-time weight prep: polyphase weight folding, bias/beta duplication over
    column phases, block-diagonal gamma^T, and casting of MXU operands."""
    layers = []
    for dkey, gkey in (("d1", "g1"), ("d2", "g2"), ("d3", "g3"), ("d4", None)):
        w_pt, bias = raw[dkey]
        cout = int(w_pt.shape[1])
        wf = _fold_deconv_weight(w_pt, compute_dtype)
        b2 = jnp.concatenate([bias, bias]).reshape(1, 2 * cout).astype(jnp.float32)
        if gkey is None:
            g2 = jnp.zeros((2 * cout, 2 * cout), compute_dtype)   # unused (no IGDN)
            bt2 = jnp.zeros((1, 2 * cout), jnp.float32)
            layers.append((wf, b2, g2, bt2, False))
        else:
            gamma, beta = raw[gkey]
            gT = gamma.T.astype(jnp.float32)
            g2 = jnp.zeros((2 * cout, 2 * cout), jnp.float32)
            g2 = g2.at[:cout, :cout].set(gT).at[cout:, cout:].set(gT)
            g2 = g2.astype(compute_dtype)
            bt2 = jnp.concatenate([beta, beta]).reshape(1, 2 * cout).astype(jnp.float32)
            layers.append((wf, b2, g2, bt2, True))
    return layers


def hyperprior_synthesis_forward(layers, x_nchw):
    """x: NCHW -> NCHW, matching HyperpriorSynthesisModel.forward."""
    x = jnp.transpose(x_nchw, (0, 2, 3, 1)).astype(jnp.float32)   # NCHW -> NHWC
    nlayers = len(layers)
    for idx, (wf, b2, g2, bt2, has_igdn) in enumerate(layers):
        # Intermediate activations stored in the compute dtype (halves HBM traffic
        # for the bf16 path); the final layer output stays f32.
        out_dt = wf.dtype if idx < nlayers - 1 else jnp.float32
        x = deconv_igdn_pallas(x, wf, b2, g2, bt2,
                               apply_igdn=has_igdn, out_dtype=out_dt)
    return jnp.transpose(x.astype(jnp.float32), (0, 3, 1, 2))     # NHWC -> NCHW


# ----------------------------- pure-JAX reference ----------------------------

def _deconv_ref(x_nhwc, w_pt, bias):
    w_conv = jnp.transpose(w_pt[:, :, ::-1, ::-1], (2, 3, 0, 1))  # HWIO
    out = jax.lax.conv_general_dilated(
        x_nhwc, w_conv, window_strides=(1, 1),
        padding=((K - 1 - PAD, K - 1 - PAD + OUT_PAD),) * 2,
        lhs_dilation=(STRIDE, STRIDE),
        dimension_numbers=("NHWC", "HWIO", "NHWC"),
        precision=jax.lax.Precision.HIGHEST)
    return out + bias


def _igdn_ref(x_nhwc, gamma, beta):
    norm = jnp.einsum("bhwc,dc->bhwd", x_nhwc * x_nhwc, gamma,
                      precision=jax.lax.Precision.HIGHEST) + beta
    return x_nhwc * jnp.sqrt(norm)


def reference_forward(params, x_nchw):
    x = jnp.transpose(x_nchw, (0, 2, 3, 1)).astype(jnp.float32)
    x = _deconv_ref(x, *params["d1"]); x = _igdn_ref(x, *params["g1"])
    x = _deconv_ref(x, *params["d2"]); x = _igdn_ref(x, *params["g2"])
    x = _deconv_ref(x, *params["d3"]); x = _igdn_ref(x, *params["g3"])
    x = _deconv_ref(x, *params["d4"])
    return jnp.transpose(x, (0, 3, 1, 2))


if __name__ == "__main__":
    N_, M_, OUT_C = 16, 8, 3
    B, H, W = 2, 4, 4

    key = jax.random.PRNGKey(0)
    kx, kp = jax.random.split(key)
    x = jax.random.normal(kx, (B, M_, H, W), jnp.float32)   # NCHW, like PyTorch
    raw_params = init_params(kp, N_, M_, OUT_C)

    y_ref = jax.block_until_ready(reference_forward(raw_params, x))

    # Exact-math path: f32 MXU operands (tight validation of polyphase + fusion).
    params_f32 = prepare_params(raw_params, compute_dtype=jnp.float32)
    y32 = jax.block_until_ready(hyperprior_synthesis_forward(params_f32, x))
    assert y32.shape == (B, OUT_C, 16 * H, 16 * W), y32.shape
    err32 = float(jnp.max(jnp.abs(y32 - y_ref)) / (jnp.max(jnp.abs(y_ref)) + 1e-6))
    assert err32 < 2e-3, f"f32 path mismatch vs reference: rel_err={err32}"

    # Fast path (default): bf16 MXU operands, f32 accumulation / IGDN math.
    params_bf16 = prepare_params(raw_params)                 # bf16 default
    y = jax.block_until_ready(hyperprior_synthesis_forward(params_bf16, x))
    assert y.shape == (B, OUT_C, 16 * H, 16 * W), y.shape
    assert bool(jnp.isfinite(y).all())
    err = float(jnp.max(jnp.abs(y - y_ref)) / (jnp.max(jnp.abs(y_ref)) + 1e-6))
    assert err < 5e-2, f"bf16 path mismatch vs reference: rel_err={err}"

    print("KERNEL_OK")
</pallas_src>

<mosaic_0001>
module attributes {stable_mosaic.version = 11 : i64} {
  func.func @_deconv_igdn_kernel(%arg0: i32, %arg1: i32, %arg2: memref<1x4x4x8xf32, #tpu.memory_space<vmem>>, %arg3: memref<1x1x4x8xf32, #tpu.memory_space<vmem>>, %arg4: memref<1x1x4x8xf32, #tpu.memory_space<vmem>>, %arg5: memref<5x24x32xf32, #tpu.memory_space<vmem>>, %arg6: memref<1x32xf32, #tpu.memory_space<vmem>>, %arg7: memref<32x32xf32, #tpu.memory_space<vmem>>, %arg8: memref<1x32xf32, #tpu.memory_space<vmem>>, %arg9: memref<1x4x2x4x32xf32, #tpu.memory_space<vmem>>, %arg10: memref<6x6x8xf32, #tpu.memory_space<vmem>>, %arg11: memref<3x16x24xf32, #tpu.memory_space<vmem>>) attributes {dimension_semantics = [#tpu.dimension_semantics<parallel>, #tpu.dimension_semantics<parallel>], iteration_bounds = array<i64: 2, 1>, scalar_prefetch = 0 : i64, scratch_operands = 2 : i64, tpu.core_type = #tpu.core_type<tc>, window_params = [{transform_indices = @transform_0, window_bounds = array<i64: 1, 4, 4, 8>}, {transform_indices = @transform_1, window_bounds = array<i64: 1, 1, 4, 8>}, {transform_indices = @transform_2, window_bounds = array<i64: 1, 1, 4, 8>}, {pipeline_mode = #tpu.pipeline_mode<synchronous>, transform_indices = @transform_3, window_bounds = array<i64: 5, 24, 32>}, {pipeline_mode = #tpu.pipeline_mode<synchronous>, transform_indices = @transform_4, window_bounds = array<i64: 1, 32>}, {pipeline_mode = #tpu.pipeline_mode<synchronous>, transform_indices = @transform_5, window_bounds = array<i64: 32, 32>}, {pipeline_mode = #tpu.pipeline_mode<synchronous>, transform_indices = @transform_6, window_bounds = array<i64: 1, 32>}, {transform_indices = @transform_7, window_bounds = array<i64: 1, 4, 2, 4, 32>}]} {
    %cst = arith.constant 0.000000e+00 : f32
    %0 = vector.broadcast %cst : f32 to vector<6x1x8xf32>
    %c0 = arith.constant 0 : index
    %c0_0 = arith.constant 0 : index
    %c0_1 = arith.constant 0 : index
    %1 = vector.load %arg10[%c0, %c0_0, %c0_1] : memref<6x6x8xf32, #tpu.memory_space<vmem>>, vector<6x1x8xf32>
    tpu.vector_store %arg10[%c0, %c0_0, %c0_1], %0 {strides = array<i32>} : memref<6x6x8xf32, #tpu.memory_space<vmem>>, vector<6x1x8xf32>,
    %cst_2 = arith.constant 0.000000e+00 : f32
    %2 = vector.broadcast %cst_2 : f32 to vector<6x1x8xf32>
    %c0_3 = arith.constant 0 : index
    %c5 = arith.constant 5 : index
    %c0_4 = arith.constant 0 : index
    %3 = vector.load %arg10[%c0_3, %c5, %c0_4] : memref<6x6x8xf32, #tpu.memory_space<vmem>>, vector<6x1x8xf32>
    tpu.vector_store %arg10[%c0_3, %c5, %c0_4], %2 {strides = array<i32>} : memref<6x6x8xf32, #tpu.memory_space<vmem>>, vector<6x1x8xf32>,
    %c0_5 = arith.constant 0 : index
    %c0_6 = arith.constant 0 : index
    %c0_7 = arith.constant 0 : index
    %c0_8 = arith.constant 0 : index
    %4 = vector.load %arg2[%c0_5, %c0_6, %c0_7, %c0_8] : memref<1x4x4x8xf32, #tpu.memory_space<vmem>>, vector<1x4x4x8xf32>
    %5 = vector.shape_cast %4 : vector<1x4x4x8xf32> to vector<4x4x8xf32>
    %c1 = arith.constant 1 : index
    %c1_9 = arith.constant 1 : index
    %c0_10 = arith.constant 0 : index
    %6 = vector.load %arg10[%c1, %c1_9, %c0_10] : memref<6x6x8xf32, #tpu.memory_space<vmem>>, vector<4x4x8xf32>
    tpu.vector_store %arg10[%c1, %c1_9, %c0_10], %5 {strides = array<i32>} : memref<6x6x8xf32, #tpu.memory_space<vmem>>, vector<4x4x8xf32>,
    %c0_i32 = arith.constant 0 : i32
    %7 = arith.cmpi sgt, %arg1, %c0_i32 : i32
    %8 = arith.extui %7 : i1 to i32
    %c0_i32_11 = arith.constant 0 : i32
    %9 = arith.cmpi ne, %8, %c0_i32_11 : i32
    scf.if %9 {
      %c0_126 = arith.constant 0 : index
      %c0_127 = arith.constant 0 : index
      %c0_128 = arith.constant 0 : index
      %c0_129 = arith.constant 0 : index
      %122 = vector.load %arg3[%c0_126, %c0_127, %c0_128, %c0_129] : memref<1x1x4x8xf32, #tpu.memory_space<vmem>>, vector<1x1x4x8xf32>
      %123 = vector.shape_cast %122 : vector<1x1x4x8xf32> to vector<1x4x8xf32>
      %c0_130 = arith.constant 0 : index
      %c1_131 = arith.constant 1 : index
      %c0_132 = arith.constant 0 : index
      %124 = vector.load %arg10[%c0_130, %c1_131, %c0_132] : memref<6x6x8xf32, #tpu.memory_space<vmem>>, vector<1x4x8xf32>
      tpu.vector_store %arg10[%c0_130, %c1_131, %c0_132], %123 {strides = array<i32>} : memref<6x6x8xf32, #tpu.memory_space<vmem>>, vector<1x4x8xf32>,
    } else {
    }
    %c0_i32_12 = arith.constant 0 : i32
    %10 = arith.cmpi eq, %arg1, %c0_i32_12 : i32
    %11 = arith.extui %10 : i1 to i32
    %c0_i32_13 = arith.constant 0 : i32
    %12 = arith.cmpi ne, %11, %c0_i32_13 : i32
    scf.if %12 {
      %cst_126 = arith.constant 0.000000e+00 : f32
      %122 = vector.broadcast %cst_126 : f32 to vector<1x4x8xf32>
      %c0_127 = arith.constant 0 : index
      %c1_128 = arith.constant 1 : index
      %c0_129 = arith.constant 0 : index
      %123 = vector.load %arg10[%c0_127, %c1_128, %c0_129] : memref<6x6x8xf32, #tpu.memory_space<vmem>>, vector<1x4x8xf32>
      tpu.vector_store %arg10[%c0_127, %c1_128, %c0_129], %122 {strides = array<i32>} : memref<6x6x8xf32, #tpu.memory_space<vmem>>, vector<1x4x8xf32>,
    } else {
    }
    %c0_i32_14 = arith.constant 0 : i32
    %13 = arith.cmpi slt, %arg1, %c0_i32_14 : i32
    %14 = arith.extui %13 : i1 to i32
    %c0_i32_15 = arith.constant 0 : i32
    %15 = arith.cmpi ne, %14, %c0_i32_15 : i32
    scf.if %15 {
      %c0_126 = arith.constant 0 : index
      %c0_127 = arith.constant 0 : index
      %c0_128 = arith.constant 0 : index
      %c0_129 = arith.constant 0 : index
      %122 = vector.load %arg4[%c0_126, %c0_127, %c0_128, %c0_129] : memref<1x1x4x8xf32, #tpu.memory_space<vmem>>, vector<1x1x4x8xf32>
      %123 = vector.shape_cast %122 : vector<1x1x4x8xf32> to vector<1x4x8xf32>
      %c5_130 = arith.constant 5 : index
      %c1_131 = arith.constant 1 : index
      %c0_132 = arith.constant 0 : index
      %124 = vector.load %arg10[%c5_130, %c1_131, %c0_132] : memref<6x6x8xf32, #tpu.memory_space<vmem>>, vector<1x4x8xf32>
      tpu.vector_store %arg10[%c5_130, %c1_131, %c0_132], %123 {strides = array<i32>} : memref<6x6x8xf32, #tpu.memory_space<vmem>>, vector<1x4x8xf32>,
    } else {
    }
    %c0_i32_16 = arith.constant 0 : i32
    %16 = arith.cmpi eq, %arg1, %c0_i32_16 : i32
    %17 = arith.extui %16 : i1 to i32
    %c0_i32_17 = arith.constant 0 : i32
    %18 = arith.cmpi ne, %17, %c0_i32_17 : i32
    scf.if %18 {
      %cst_126 = arith.constant 0.000000e+00 : f32
      %122 = vector.broadcast %cst_126 : f32 to vector<1x4x8xf32>
      %c5_127 = arith.constant 5 : index
      %c1_128 = arith.constant 1 : index
      %c0_129 = arith.constant 0 : index
      %123 = vector.load %arg10[%c5_127, %c1_128, %c0_129] : memref<6x6x8xf32, #tpu.memory_space<vmem>>, vector<1x4x8xf32>
      tpu.vector_store %arg10[%c5_127, %c1_128, %c0_129], %122 {strides = array<i32>} : memref<6x6x8xf32, #tpu.memory_space<vmem>>, vector<1x4x8xf32>,
    } else {
    }
    %c0_18 = arith.constant 0 : index
    %c0_19 = arith.constant 0 : index
    %c0_20 = arith.constant 0 : index
    %19 = vector.load %arg10[%c0_18, %c0_19, %c0_20] : memref<6x6x8xf32, #tpu.memory_space<vmem>>, vector<4x4x8xf32>
    %20 = vector.shape_cast %19 : vector<4x4x8xf32> to vector<16x8xf32>
    %c0_21 = arith.constant 0 : index
    %c0_22 = arith.constant 0 : index
    %c0_23 = arith.constant 0 : index
    %21 = vector.load %arg11[%c0_21, %c0_22, %c0_23] : memref<3x16x24xf32, #tpu.memory_space<vmem>>, vector<1x16x8xf32>
    %22 = vector.shape_cast %21 : vector<1x16x8xf32> to vector<16x8xf32>
    %23 = vector.shape_cast %20 : vector<16x8xf32> to vector<1x16x8xf32>
    tpu.vector_store %arg11[%c0_21, %c0_22, %c0_23], %23 {strides = array<i32>} : memref<3x16x24xf32, #tpu.memory_space<vmem>>, vector<1x16x8xf32>,
    %c0_24 = arith.constant 0 : index
    %c1_25 = arith.constant 1 : index
    %c0_26 = arith.constant 0 : index
    %24 = vector.load %arg10[%c0_24, %c1_25, %c0_26] : memref<6x6x8xf32, #tpu.memory_space<vmem>>, vector<4x4x8xf32>
    %25 = vector.shape_cast %24 : vector<4x4x8xf32> to vector<16x8xf32>
    %c0_27 = arith.constant 0 : index
    %c0_28 = arith.constant 0 : index
    %c8 = arith.constant 8 : index
    %26 = vector.load %arg11[%c0_27, %c0_28, %c8] : memref<3x16x24xf32, #tpu.memory_space<vmem>>, vector<1x16x8xf32>
    %27 = vector.shape_cast %26 : vector<1x16x8xf32> to vector<16x8xf32>
    %28 = vector.shape_cast %25 : vector<16x8xf32> to vector<1x16x8xf32>
    tpu.vector_store %arg11[%c0_27, %c0_28, %c8], %28 {strides = array<i32>} : memref<3x16x24xf32, #tpu.memory_space<vmem>>, vector<1x16x8xf32>,
    %c0_29 = arith.constant 0 : index
    %c2 = arith.constant 2 : index
    %c0_30 = arith.constant 0 : index
    %29 = vector.load %arg10[%c0_29, %c2, %c0_30] : memref<6x6x8xf32, #tpu.memory_space<vmem>>, vector<4x4x8xf32>
    %30 = vector.shape_cast %29 : vector<4x4x8xf32> to vector<16x8xf32>
    %c0_31 = arith.constant 0 : index
    %c0_32 = arith.constant 0 : index
    %c16 = arith.constant 16 : index
    %31 = vector.load %arg11[%c0_31, %c0_32, %c16] : memref<3x16x24xf32, #tpu.memory_space<vmem>>, vector<1x16x8xf32>
    %32 = vector.shape_cast %31 : vector<1x16x8xf32> to vector<16x8xf32>
    %33 = vector.shape_cast %30 : vector<16x8xf32> to vector<1x16x8xf32>
    tpu.vector_store %arg11[%c0_31, %c0_32, %c16], %33 {strides = array<i32>} : memref<3x16x24xf32, #tpu.memory_space<vmem>>, vector<1x16x8xf32>,
    %c1_33 = arith.constant 1 : index
    %c0_34 = arith.constant 0 : index
    %c0_35 = arith.constant 0 : index
    %34 = vector.load %arg10[%c1_33, %c0_34, %c0_35] : memref<6x6x8xf32, #tpu.memory_space<vmem>>, vector<4x4x8xf32>
    %35 = vector.shape_cast %34 : vector<4x4x8xf32> to vector<16x8xf32>
    %c1_36 = arith.constant 1 : index
    %c0_37 = arith.constant 0 : index
    %c0_38 = arith.constant 0 : index
    %36 = vector.load %arg11[%c1_36, %c0_37, %c0_38] : memref<3x16x24xf32, #tpu.memory_space<vmem>>, vector<1x16x8xf32>
    %37 = vector.shape_cast %36 : vector<1x16x8xf32> to vector<16x8xf32>
    %38 = vector.shape_cast %35 : vector<16x8xf32> to vector<1x16x8xf32>
    tpu.vector_store %arg11[%c1_36, %c0_37, %c0_38], %38 {strides = array<i32>} : memref<3x16x24xf32, #tpu.memory_space<vmem>>, vector<1x16x8xf32>,
    %c1_39 = arith.constant 1 : index
    %c1_40 = arith.constant 1 : index
    %c0_41 = arith.constant 0 : index
    %39 = vector.load %arg10[%c1_39, %c1_40, %c0_41] : memref<6x6x8xf32, #tpu.memory_space<vmem>>, vector<4x4x8xf32>
    %40 = vector.shape_cast %39 : vector<4x4x8xf32> to vector<16x8xf32>
    %c1_42 = arith.constant 1 : index
    %c0_43 = arith.constant 0 : index
    %c8_44 = arith.constant 8 : index
    %41 = vector.load %arg11[%c1_42, %c0_43, %c8_44] : memref<3x16x24xf32, #tpu.memory_space<vmem>>, vector<1x16x8xf32>
    %42 = vector.shape_cast %41 : vector<1x16x8xf32> to vector<16x8xf32>
    %43 = vector.shape_cast %40 : vector<16x8xf32> to vector<1x16x8xf32>
    tpu.vector_store %arg11[%c1_42, %c0_43, %c8_44], %43 {strides = array<i32>} : memref<3x16x24xf32, #tpu.memory_space<vmem>>, vector<1x16x8xf32>,
    %c1_45 = arith.constant 1 : index
    %c2_46 = arith.constant 2 : index
    %c0_47 = arith.constant 0 : index
    %44 = vector.load %arg10[%c1_45, %c2_46, %c0_47] : memref<6x6x8xf32, #tpu.memory_space<vmem>>, vector<4x4x8xf32>
    %45 = vector.shape_cast %44 : vector<4x4x8xf32> to vector<16x8xf32>
    %c1_48 = arith.constant 1 : index
    %c0_49 = arith.constant 0 : index
    %c16_50 = arith.constant 16 : index
    %46 = vector.load %arg11[%c1_48, %c0_49, %c16_50] : memref<3x16x24xf32, #tpu.memory_space<vmem>>, vector<1x16x8xf32>
    %47 = vector.shape_cast %46 : vector<1x16x8xf32> to vector<16x8xf32>
    %48 = vector.shape_cast %45 : vector<16x8xf32> to vector<1x16x8xf32>
    tpu.vector_store %arg11[%c1_48, %c0_49, %c16_50], %48 {strides = array<i32>} : memref<3x16x24xf32, #tpu.memory_space<vmem>>, vector<1x16x8xf32>,
    %c2_51 = arith.constant 2 : index
    %c0_52 = arith.constant 0 : index
    %c0_53 = arith.constant 0 : index
    %49 = vector.load %arg10[%c2_51, %c0_52, %c0_53] : memref<6x6x8xf32, #tpu.memory_space<vmem>>, vector<4x4x8xf32>
    %50 = vector.shape_cast %49 : vector<4x4x8xf32> to vector<16x8xf32>
    %c2_54 = arith.constant 2 : index
    %c0_55 = arith.constant 0 : index
    %c0_56 = arith.constant 0 : index
    %51 = vector.load %arg11[%c2_54, %c0_55, %c0_56] : memref<3x16x24xf32, #tpu.memory_space<vmem>>, vector<1x16x8xf32>
    %52 = vector.shape_cast %51 : vector<1x16x8xf32> to vector<16x8xf32>
    %53 = vector.shape_cast %50 : vector<16x8xf32> to vector<1x16x8xf32>
    tpu.vector_store %arg11[%c2_54, %c0_55, %c0_56], %53 {strides = array<i32>} : memref<3x16x24xf32, #tpu.memory_space<vmem>>, vector<1x16x8xf32>,
    %c2_57 = arith.constant 2 : index
    %c1_58 = arith.constant 1 : index
    %c0_59 = arith.constant 0 : index
    %54 = vector.load %arg10[%c2_57, %c1_58, %c0_59] : memref<6x6x8xf32, #tpu.memory_space<vmem>>, vector<4x4x8xf32>
    %55 = vector.shape_cast %54 : vector<4x4x8xf32> to vector<16x8xf32>
    %c2_60 = arith.constant 2 : index
    %c0_61 = arith.constant 0 : index
    %c8_62 = arith.constant 8 : index
    %56 = vector.load %arg11[%c2_60, %c0_61, %c8_62] : memref<3x16x24xf32, #tpu.memory_space<vmem>>, vector<1x16x8xf32>
    %57 = vector.shape_cast %56 : vector<1x16x8xf32> to vector<16x8xf32>
    %58 = vector.shape_cast %55 : vector<16x8xf32> to vector<1x16x8xf32>
    tpu.vector_store %arg11[%c2_60, %c0_61, %c8_62], %58 {strides = array<i32>} : memref<3x16x24xf32, #tpu.memory_space<vmem>>, vector<1x16x8xf32>,
    %c2_63 = arith.constant 2 : index
    %c2_64 = arith.constant 2 : index
    %c0_65 = arith.constant 0 : index
    %59 = vector.load %arg10[%c2_63, %c2_64, %c0_65] : memref<6x6x8xf32, #tpu.memory_space<vmem>>, vector<4x4x8xf32>
    %60 = vector.shape_cast %59 : vector<4x4x8xf32> to vector<16x8xf32>
    %c2_66 = arith.constant 2 : index
    %c0_67 = arith.constant 0 : index
    %c16_68 = arith.constant 16 : index
    %61 = vector.load %arg11[%c2_66, %c0_67, %c16_68] : memref<3x16x24xf32, #tpu.memory_space<vmem>>, vector<1x16x8xf32>
    %62 = vector.shape_cast %61 : vector<1x16x8xf32> to vector<16x8xf32>
    %63 = vector.shape_cast %60 : vector<16x8xf32> to vector<1x16x8xf32>
    tpu.vector_store %arg11[%c2_66, %c0_67, %c16_68], %63 {strides = array<i32>} : memref<3x16x24xf32, #tpu.memory_space<vmem>>, vector<1x16x8xf32>,
    %c0_69 = arith.constant 0 : index
    %c0_70 = arith.constant 0 : index
    %c0_71 = arith.constant 0 : index
    %64 = vector.load %arg11[%c0_69, %c0_70, %c0_71] : memref<3x16x24xf32, #tpu.memory_space<vmem>>, vector<1x16x24xf32>
    %65 = vector.shape_cast %64 : vector<1x16x24xf32> to vector<16x24xf32>
    %c0_72 = arith.constant 0 : index
    %c0_73 = arith.constant 0 : index
    %c0_74 = arith.constant 0 : index
    %66 = vector.load %arg5[%c0_72, %c0_73, %c0_74] : memref<5x24x32xf32, #tpu.memory_space<vmem>>, vector<1x24x32xf32>
    %67 = vector.shape_cast %66 : vector<1x24x32xf32> to vector<24x32xf32>
    %cst_75 = arith.constant dense<0.000000e+00> : vector<16x32xf32>
    %68 = tpu.matmul %65, %67, %cst_75 {dimension_numbers = #tpu.dot_dimension_numbers<[1], [0], [0], [1], [0, 0, 1, 1], [], []>} : vector<16x24xf32>, vector<24x32xf32>, vector<16x32xf32> -> vector<16x32xf32>
    %c1_76 = arith.constant 1 : index
    %c0_77 = arith.constant 0 : index
    %c0_78 = arith.constant 0 : index
    %69 = vector.load %arg11[%c1_76, %c0_77, %c0_78] : memref<3x16x24xf32, #tpu.memory_space<vmem>>, vector<1x16x24xf32>
    %70 = vector.shape_cast %69 : vector<1x16x24xf32> to vector<16x24xf32>
    %c1_79 = arith.constant 1 : index
    %c0_80 = arith.constant 0 : index
    %c0_81 = arith.constant 0 : index
    %71 = vector.load %arg5[%c1_79, %c0_80, %c0_81] : memref<5x24x32xf32, #tpu.memory_space<vmem>>, vector<1x24x32xf32>
    %72 = vector.shape_cast %71 : vector<1x24x32xf32> to vector<24x32xf32>
    %cst_82 = arith.constant dense<0.000000e+00> : vector<16x32xf32>
    %73 = tpu.matmul %70, %72, %cst_82 {dimension_numbers = #tpu.dot_dimension_numbers<[1], [0], [0], [1], [0, 0, 1, 1], [], []>} : vector<16x24xf32>, vector<24x32xf32>, vector<16x32xf32> -> vector<16x32xf32>
    %74 = arith.addf %68, %73 : vector<16x32xf32>
    %c2_83 = arith.constant 2 : index
    %c0_84 = arith.constant 0 : index
    %c0_85 = arith.constant 0 : index
    %75 = vector.load %arg11[%c2_83, %c0_84, %c0_85] : memref<3x16x24xf32, #tpu.memory_space<vmem>>, vector<1x16x24xf32>
    %76 = vector.shape_cast %75 : vector<1x16x24xf32> to vector<16x24xf32>
    %c2_86 = arith.constant 2 : index
    %c0_87 = arith.constant 0 : index
    %c0_88 = arith.constant 0 : index
    %77 = vector.load %arg5[%c2_86, %c0_87, %c0_88] : memref<5x24x32xf32, #tpu.memory_space<vmem>>, vector<1x24x32xf32>
    %78 = vector.shape_cast %77 : vector<1x24x32xf32> to vector<24x32xf32>
    %cst_89 = arith.constant dense<0.000000e+00> : vector<16x32xf32>
    %79 = tpu.matmul %76, %78, %cst_89 {dimension_numbers = #tpu.dot_dimension_numbers<[1], [0], [0], [1], [0, 0, 1, 1], [], []>} : vector<16x24xf32>, vector<24x32xf32>, vector<16x32xf32> -> vector<16x32xf32>
    %80 = arith.addf %74, %79 : vector<16x32xf32>
    %c0_90 = arith.constant 0 : index
    %c0_91 = arith.constant 0 : index
    %81 = vector.load %arg6[%c0_90, %c0_91] : memref<1x32xf32, #tpu.memory_space<vmem>>, vector<1x32xf32>
    %82 = vector.broadcast %81 : vector<1x32xf32> to vector<16x32xf32>
    %83 = arith.addf %80, %82 : vector<16x32xf32>
    %84 = arith.mulf %83, %83 : vector<16x32xf32>
    %c0_92 = arith.constant 0 : index
    %c0_93 = arith.constant 0 : index
    %85 = vector.load %arg7[%c0_92, %c0_93] : memref<32x32xf32, #tpu.memory_space<vmem>>, vector<32x32xf32>
    %cst_94 = arith.constant dense<0.000000e+00> : vector<16x32xf32>
    %86 = tpu.matmul %84, %85, %cst_94 {dimension_numbers = #tpu.dot_dimension_numbers<[1], [0], [0], [1], [0, 0, 1, 1], [], []>} : vector<16x32xf32>, vector<32x32xf32>, vector<16x32xf32> -> vector<16x32xf32>
    %c0_95 = arith.constant 0 : index
    %c0_96 = arith.constant 0 : index
    %87 = vector.load %arg8[%c0_95, %c0_96] : memref<1x32xf32, #tpu.memory_space<vmem>>, vector<1x32xf32>
    %88 = vector.broadcast %87 : vector<1x32xf32> to vector<16x32xf32>
    %89 = arith.addf %86, %88 : vector<16x32xf32>
    %90 = math.sqrt %89 : vector<16x32xf32>
    %91 = arith.mulf %83, %90 : vector<16x32xf32>
    %92 = vector.shape_cast %91 : vector<16x32xf32> to vector<4x4x32xf32>
    %c0_97 = arith.constant 0 : index
    %c0_98 = arith.constant 0 : index
    %c0_99 = arith.constant 0 : index
    %c0_100 = arith.constant 0 : index
    %c0_101 = arith.constant 0 : index
    %93 = vector.load %arg9[%c0_97, %c0_98, %c0_99, %c0_100, %c0_101] : memref<1x4x2x4x32xf32, #tpu.memory_space<vmem>>, vector<1x4x1x4x32xf32>
    %94 = vector.shape_cast %93 : vector<1x4x1x4x32xf32> to vector<4x4x32xf32>
    %95 = vector.shape_cast %92 : vector<4x4x32xf32> to vector<1x4x1x4x32xf32>
    tpu.vector_store %arg9[%c0_97, %c0_98, %c0_99, %c0_100, %c0_101], %95 {strides = array<i32>} : memref<1x4x2x4x32xf32, #tpu.memory_space<vmem>>, vector<1x4x1x4x32xf32>,
    %c1_102 = arith.constant 1 : index
    %c0_103 = arith.constant 0 : index
    %c0_104 = arith.constant 0 : index
    %96 = vector.load %arg11[%c1_102, %c0_103, %c0_104] : memref<3x16x24xf32, #tpu.memory_space<vmem>>, vector<1x16x24xf32>
    %97 = vector.shape_cast %96 : vector<1x16x24xf32> to vector<16x24xf32>
    %c3 = arith.constant 3 : index
    %c0_105 = arith.constant 0 : index
    %c0_106 = arith.constant 0 : index
    %98 = vector.load %arg5[%c3, %c0_105, %c0_106] : memref<5x24x32xf32, #tpu.memory_space<vmem>>, vector<1x24x32xf32>
    %99 = vector.shape_cast %98 : vector<1x24x32xf32> to vector<24x32xf32>
    %cst_107 = arith.constant dense<0.000000e+00> : vector<16x32xf32>
    %100 = tpu.matmul %97, %99, %cst_107 {dimension_numbers = #tpu.dot_dimension_numbers<[1], [0], [0], [1], [0, 0, 1, 1], [], []>} : vector<16x24xf32>, vector<24x32xf32>, vector<16x32xf32> -> vector<16x32xf32>
    %c2_108 = arith.constant 2 : index
    %c0_109 = arith.constant 0 : index
    %c0_110 = arith.constant 0 : index
    %101 = vector.load %arg11[%c2_108, %c0_109, %c0_110] : memref<3x16x24xf32, #tpu.memory_space<vmem>>, vector<1x16x24xf32>
    %102 = vector.shape_cast %101 : vector<1x16x24xf32> to vector<16x24xf32>
    %c4 = arith.constant 4 : index
    %c0_111 = arith.constant 0 : index
    %c0_112 = arith.constant 0 : index
    %103 = vector.load %arg5[%c4, %c0_111, %c0_112] : memref<5x24x32xf32, #tpu.memory_space<vmem>>, vector<1x24x32xf32>
    %104 = vector.shape_cast %103 : vector<1x24x32xf32> to vector<24x32xf32>
    %cst_113 = arith.constant dense<0.000000e+00> : vector<16x32xf32>
    %105 = tpu.matmul %102, %104, %cst_113 {dimension_numbers = #tpu.dot_dimension_numbers<[1], [0], [0], [1], [0, 0, 1, 1], [], []>} : vector<16x24xf32>, vector<24x32xf32>, vector<16x32xf32> -> vector<16x32xf32>
    %106 = arith.addf %100, %105 : vector<16x32xf32>
    %c0_114 = arith.constant 0 : index
    %c0_115 = arith.constant 0 : index
    %107 = vector.load %arg6[%c0_114, %c0_115] : memref<1x32xf32, #tpu.memory_space<vmem>>, vector<1x32xf32>
    %108 = vector.broadcast %107 : vector<1x32xf32> to vector<16x32xf32>
    %109 = arith.addf %106, %108 : vector<16x32xf32>
    %110 = arith.mulf %109, %109 : vector<16x32xf32>
    %c0_116 = arith.constant 0 : index
    %c0_117 = arith.constant 0 : index
    %111 = vector.load %arg7[%c0_116, %c0_117] : memref<32x32xf32, #tpu.memory_space<vmem>>, vector<32x32xf32>
    %cst_118 = arith.constant dense<0.000000e+00> : vector<16x32xf32>
    %112 = tpu.matmul %110, %111, %cst_118 {dimension_numbers = #tpu.dot_dimension_numbers<[1], [0], [0], [1], [0, 0, 1, 1], [], []>} : vector<16x32xf32>, vector<32x32xf32>, vector<16x32xf32> -> vector<16x32xf32>
    %c0_119 = arith.constant 0 : index
    %c0_120 = arith.constant 0 : index
    %113 = vector.load %arg8[%c0_119, %c0_120] : memref<1x32xf32, #tpu.memory_space<vmem>>, vector<1x32xf32>
    %114 = vector.broadcast %113 : vector<1x32xf32> to vector<16x32xf32>
    %115 = arith.addf %112, %114 : vector<16x32xf32>
    %116 = math.sqrt %115 : vector<16x32xf32>
    %117 = arith.mulf %109, %116 : vector<16x32xf32>
    %118 = vector.shape_cast %117 : vector<16x32xf32> to vector<4x4x32xf32>
    %c0_121 = arith.constant 0 : index
    %c0_122 = arith.constant 0 : index
    %c1_123 = arith.constant 1 : index
    %c0_124 = arith.constant 0 : index
    %c0_125 = arith.constant 0 : index
    %119 = vector.load %arg9[%c0_121, %c0_122, %c1_123, %c0_124, %c0_125] : memref<1x4x2x4x32xf32, #tpu.memory_space<vmem>>, vector<1x4x1x4x32xf32>
    %120 = vector.shape_cast %119 : vector<1x4x1x4x32xf32> to vector<4x4x32xf32>
    %121 = vector.shape_cast %118 : vector<4x4x32xf32> to vector<1x4x1x4x32xf32>
    tpu.vector_store %arg9[%c0_121, %c0_122, %c1_123, %c0_124, %c0_125], %121 {strides = array<i32>} : memref<1x4x2x4x32xf32, #tpu.memory_space<vmem>>, vector<1x4x1x4x32xf32>,
    return
  }
  func.func @transform_0(%arg0: i32, %arg1: i32) -> (i32, i32, i32, i32) {
    %c0_i32 = arith.constant 0 : i32
    %c0_i32_0 = arith.constant 0 : i32
    %c0_i32_1 = arith.constant 0 : i32
    return %arg0, %arg1, %c0_i32, %c0_i32_0 : i32, i32, i32, i32
  }
  func.func @transform_1(%arg0: i32, %arg1: i32) -> (i32, i32, i32, i32) {
    %c4_i32 = arith.constant 4 : i32
    %0 = arith.muli %arg1, %c4_i32 : i32
    %c1_i32 = arith.constant 1 : i32
    %1 = arith.subi %0, %c1_i32 : i32
    %c0_i32 = arith.constant 0 : i32
    %2 = arith.maxsi %1, %c0_i32 : i32
    %c0_i32_0 = arith.constant 0 : i32
    %c0_i32_1 = arith.constant 0 : i32
    %c0_i32_2 = arith.constant 0 : i32
    return %arg0, %2, %c0_i32_0, %c0_i32_1 : i32, i32, i32, i32
  }
  func.func @transform_2(%arg0: i32, %arg1: i32) -> (i32, i32, i32, i32) {
    %c1_i32 = arith.constant 1 : i32
    %0 = arith.addi %arg1, %c1_i32 : i32
    %c4_i32 = arith.constant 4 : i32
    %1 = arith.muli %0, %c4_i32 : i32
    %c3_i32 = arith.constant 3 : i32
    %2 = arith.minsi %1, %c3_i32 : i32
    %c0_i32 = arith.constant 0 : i32
    %c0_i32_0 = arith.constant 0 : i32
    %c0_i32_1 = arith.constant 0 : i32
    return %arg0, %2, %c0_i32, %c0_i32_0 : i32, i32, i32, i32
  }
  func.func @transform_3(%arg0: i32, %arg1: i32) -> (i32, i32, i32) {
    %c0_i32 = arith.constant 0 : i32
    %c0_i32_0 = arith.constant 0 : i32
    %c0_i32_1 = arith.constant 0 : i32
    %c0_i32_2 = arith.constant 0 : i32
    return %c0_i32, %c0_i32_0, %c0_i32_1 : i32, i32, i32
  }
  func.func @transform_4(%arg0: i32, %arg1: i32) -> (i32, i32) {
    %c0_i32 = arith.constant 0 : i32
    %c0_i32_0 = arith.constant 0 : i32
    %c0_i32_1 = arith.constant 0 : i32
    return %c0_i32, %c0_i32_0 : i32, i32
  }
  func.func @transform_5(%arg0: i32, %arg1: i32) -> (i32, i32) {
    %c0_i32 = arith.constant 0 : i32
    %c0_i32_0 = arith.constant 0 : i32
    %c0_i32_1 = arith.constant 0 : i32
    return %c0_i32, %c0_i32_0 : i32, i32
  }
  func.func @transform_6(%arg0: i32, %arg1: i32) -> (i32, i32) {
    %c0_i32 = arith.constant 0 : i32
    %c0_i32_0 = arith.constant 0 : i32
    %c0_i32_1 = arith.constant 0 : i32
    return %c0_i32, %c0_i32_0 : i32, i32
  }
  func.func @transform_7(%arg0: i32, %arg1: i32) -> (i32, i32, i32, i32, i32) {
    %c0_i32 = arith.constant 0 : i32
    %c0_i32_0 = arith.constant 0 : i32
    %c0_i32_1 = arith.constant 0 : i32
    %c0_i32_2 = arith.constant 0 : i32
    return %arg0, %arg1, %c0_i32, %c0_i32_0, %c0_i32_1 : i32, i32, i32, i32, i32
  }
}

</mosaic_0001>

<bundles_post_ra>
// kernel: tpu_custom_call.1
= control target key start
LH: loop header
LB: loop body
LE: loop exit
PB: predicated region body
PF: predicated region fallthrough
CT: control target
= control target key end

     0   :  { %s2421_s0 = inlined_call_operand.hbm [shape: f32[2,4,4,8], index: 0, kind: input, shape index: {}]   ;;  %s2422_s1 = inlined_call_operand.hbm [shape: f32[2,4,4,8], index: 1, kind: input, shape index: {}]   ;;  %s2423_s2 = inlined_call_operand.hbm [shape: f32[2,4,4,8], index: 2, kind: input, shape index: {}]   ;;  %s2424_s3 = inlined_call_operand.hbm [shape: f32[5,24,32], index: 3, kind: input, shape index: {}]   ;;  %s2425_s4 = inlined_call_operand.vmem [shape: f32[1,32], index: 4, kind: input, shape index: {}]   ;;  %s2426_s5 = inlined_call_operand.hbm [shape: f32[32,32], index: 5, kind: input, shape index: {}]   ;;  %s2427_s6 = inlined_call_operand.vmem [shape: f32[1,32], index: 6, kind: input, shape index: {}]   ;;  %s2428_s7 = inlined_call_operand.hbm [shape: f32[2,4,2,4,32], index: 7, kind: output, shape index: {}]  }
   0x1   :  { %2444 = sst [smem:[#allocation25_spill]] %s2422_s1 }
   0x2   :  { %2445 = sst [smem:[#allocation26_spill]] %s2424_s3 }
   0x3   :  { %2446 = sst [smem:[#allocation27_spill]] %s2426_s5 }
   0x4   :  { %2447 = sst [smem:[#allocation28_spill]] %s2428_s7 }
   0x5   :  { %12 = vsyncpa [#allocation5], 0 }
   0x6   :  { %14 = vsyncpa [#allocation5 + $0x1], 0 }
   0x7   :  { %15 = vsyncpa [#allocation8], 0 }
   0x8   :  { %17 = vsyncpa [#allocation8 + $0x1], 0 }
   0x9   :  { %18 = vsyncpa [#allocation11], 0 }
   0xa   :  { %19 = vsyncpa [#allocation6], 0 }
   0xb   :  { %21 = vsyncpa [#allocation6 + $0x1], 0  ;;  %s2095_s24 = smov 0   ;;  %s2097_s25 = smov 0  }
   0xc   :  { %s2099_s26 = smov 0   ;;  %s2101_s27 = smov 0  }
   0xd   :  { %s2103_s28 = smov 0   ;;  %s2105_s29 = smov 0  }
   0xe LB: > { %2448 = sst [smem:[#allocation18_spill]] %s2018_s24  ;;  %s2126_s30 = sadd.s32 4294967295, %s2038_s29   ;;  %s2038_s29 = sphi %s2105_s29, %s27_s29   ;;  %s2034_s28 = sphi %s2103_s28, %s2484_s28   ;;  %s2030_s27 = sphi %s2101_s27, %s2483_s27   ;;  %s2026_s26 = sphi %s2099_s26, %s2482_s26   ;;  %s2022_s25 = sphi %s2097_s25, %s2486_s25   ;;  %s2018_s24 = sphi %s2095_s24, %s2485_s24  }
   0xf   : > { %2449 = sst [smem:[#allocation19_spill]] %s2026_s26  ;;  %s1528_s8 = sadd.s32 4294967294, %s2038_s29  }
  0x10   : > { %2450 = sst [smem:[#allocation20_spill]] %s2034_s28  ;;  %p61_p0 = scmp.ne.s32.totalorder %s2022_s25, %s2018_s24 }
  0x11   : > { %2451 = sst [smem:[#allocation21_spill]] %s2038_s29  ;;  %p2436_p1 = scmp.eq.s32.totalorder %s2126_s30, 0 }
  0x12   : > { %p249_p3 = scmp.eq.s32.totalorder %s1528_s8, 1  ;;  %p1529_p5 = scmp.ge.s32.totalorder %s2038_s29, 1 }
  0x13   : > { %p2135_p4 = por %p2436_p1, %p61_p0  ;;  %p256_p7 = scmp.lt.s32.totalorder %s2038_s29, 3 }
  0x14   : > { %p2140_p6 = por %p249_p3, %p61_p0  ;;  %s2040_s12 = smov [#allocation10]  }
  0x15   : > { %p2145_p8 = pnand %p1529_p5, %p256_p7  ;;  %s268_s13 = sshll.u32 %s2040_s12, 4  ;;  %s269_s13 = int_to_ptr.vmem [resolvable:$true] %s268_s13 }
  0x16   : > { %s2453_s10 = scalar_select %p2140_p6, 1, 0 }
  0x17   : > { %p1702_p9 = pneg %p2145_p8  ;;  %s39_s15 = sadd.s32 1, %s2034_s28 }
  0x18   : > { %2454 = sst [smem:[#allocation22_spill]] %s2453_s10  ;;  %s1825_s16 = scalar_lea.vmem %s269_s13, 1920 }
  0x19   : > { %p2154_p11 = pnand %p1702_p9, %p2436_p1  ;;  %p1826_p13 = scmp.ne.s32.totalorder %s269_s13, %s1825_s16 }
  0x1a   : > { %p1833_p5 = scmp.lt.s32.totalorder %s269_s13, %s269_s13  ;;  %p1834_p7 = scmp.lt.s32.totalorder %s1825_s16, %s1825_s16 }
  0x1b   : > { %p2437_p12 = pneg %p2154_p11 }
  0x1c   : > { %p1835_p2 = por %p1834_p7, %p1833_p5 }
  0x1d   : > { %p1828_p0 = pnand %p1826_p13, %p2437_p12 }
  0x1f   : > { %p1829_p3 = pneg %p1828_p0 }
  0x21   : > { %p1836_p10 = pnand %p1835_p2, %p1829_p3 }
  0x23   : > { %1839 = shalt.err (!%p1836_p10)
}
  0x24   : > { %s2429_s17 = smov 128   ;;  %s2430_s18 = smov 8  }
  0x25   : > { %s2457_s3 = sld [smem:[#allocation26_spill]]  ;;  %p41_p2 = scmp.ge.s32.totalorder %s39_s15, 2 }
  0x26   : > { %s48_s21 = sadd.s32 1, %s2026_s26  ;;  %p55_p9 = scmp.ne.s32.totalorder %s2026_s26, %s2022_s25 }
  0x27   : > { %p56_p10 = scmp.eq.s32.totalorder %s2038_s29, 0  ;;  %s2488_s15 = smov (%p41_p2, %s39_s15), 0 }
  0x28   : > { %2458 = sst [smem:[#allocation23_spill]] %s2488_s15  ;;  %p2459_p0 = scmp.eq.s32.totalorder %s2126_s30, 1 }
  0x29   : > { %p57_p13 = por %p56_p10, %p55_p9  ;;  %s43_s23 = ssub.s32 %s2034_s28, %s2488_s15 }
  0x2a   : > { %p2180_p3 = por %p2459_p0, %p55_p9  ;;  %p1725_p5 = scmp.lt.s32.totalorder %s2038_s29, 2 }
  0x2b   : > { %1705 = dma.hbm_to_vmem [thread:$0]  (!%p2154_p11), %s2457_s3, 1920, %s269_s13, [#allocation11], %s2429_s17, %s2429_s17, %s2430_s18  }
  0x2c   : > { %s2460_s22 = scalar_select %p2180_p3, 1, 0 }
  0x2d   : > { %p46_p7 = scmp.eq.s32.totalorder %s43_s23, 0  ;;  %s2188_s8 = sand.u32 1, %s2026_s26  }
  0x2e   : > { %s2191_s12 = sshll.u32 %s2034_s28, 8  ;;  %p2193_p2 = pnand %p1725_p5, %p57_p13 }
  0x2f   : > { %s2198_s16 = scalar_select %p46_p7, %s2026_s26, %s48_s21  }
  0x30   : > { %s324_s17 = sand.u32 1, %s2038_s29   ;;  %s2440_s18 = sshll.u32 %s2188_s8, 2 }
  0x31   : > { %2462 = sst [smem:[#allocation24_spill]] %s2198_s16  ;;  %s328_s10 = scalar_lea.vmem [#allocation7], %s2440_s18 }
  0x32   : > { %s2463_s1 = sld [smem:[#allocation25_spill]]  ;;  %s341_s24 = sshll.u32 %s328_s10, 4  ;;  %s342_s24 = int_to_ptr.vmem [resolvable:$true] %s341_s24 }
  0x33   : > { %s2212_s7 = scalar_lea.sflag [#allocation8], %s324_s17  ;;  %p2438_p9 = pneg %p2193_p2 }
  0x34   : > { %s1853_s21 = scalar_lea.vmem %s342_s24, 64  ;;  %s2043_s19 = smov [#allocation7]  }
  0x35   : > { %p1854_p10 = scmp.ne.s32.totalorder %s342_s24, %s1853_s21  ;;  %s1858_s20 = sshll.u32 %s2043_s19, 4  ;;  %s1859_s20 = int_to_ptr.vmem [resolvable:$false] %s1858_s20 }
  0x36   : > { %s1860_s23 = scalar_lea.vmem %s1859_s20, 128  ;;  %p1861_p5 = scmp.lt.s32.totalorder %s342_s24, %s1859_s20 }
  0x37   : > { %p1856_p13 = pnand %p1854_p10, %p2438_p9  ;;  %p1862_p7 = scmp.lt.s32.totalorder %s1860_s23, %s1853_s21 }
  0x38   : > { %s339_s28 = scalar_lea.hbm %s2463_s1, %s2191_s12 }
  0x39   : > { %p1857_p0 = pneg %p1856_p13  ;;  %p1863_p1 = por %p1862_p7, %p1861_p5 }
  0x3b   : > { %p1864_p12 = pnand %p1863_p1, %p1857_p0 }
  0x3d   : > { %1867 = shalt.err (!%p1864_p12)
}
  0x3e   : > { %1715 = dma.hbm_to_vmem [thread:$0]  (!%p2193_p2), %s339_s28, 64, %s342_s24, %s2212_s7  }
  0x3f   : > { %s2044_s3 = smov [#allocation12]   ;;  %s1533_s15 = sshll.u32 %s2188_s8, 4 }
  0x40   : > { %s284_s10 = sshll.u32 %s2044_s3, 4  ;;  %p2464_p13 = pneg %p2154_p11  ;;  %s285_s10 = int_to_ptr.vmem [resolvable:$true] %s284_s10 }
  0x41   : > { %s1879_s17 = scalar_lea.vmem %s285_s10, 512  ;;  %p1887_p3 = scmp.lt.s32.totalorder %s285_s10, %s285_s10 }
  0x42   : > { %p1880_p10 = scmp.ne.s32.totalorder %s285_s10, %s1879_s17  ;;  %p1888_p5 = scmp.lt.s32.totalorder %s1879_s17, %s1879_s17 }
  0x44   : > { %p1882_p9 = pnand %p1880_p10, %p2464_p13  ;;  %p1889_p1 = por %p1888_p5, %p1887_p3 }
  0x46   : > { %p1883_p6 = pneg %p1882_p9 }
  0x48   : > { %p1890_p12 = pnand %p1889_p1, %p1883_p6 }
  0x4a   : > { %1893 = shalt.err (!%p1890_p12)
}
  0x4b   : > { %s2465_s23 = smov 8   ;;  %s2466_s21 = smov 128  }
  0x4c   : > { %s2467_s5 = sld [smem:[#allocation27_spill]]  ;;  %s305_s19 = scalar_lea.vmem [#allocation4], %s1533_s15 }
  0x4d   : > { %s314_s20 = sshll.u32 %s305_s19, 4  ;;  %s302_s3 = scalar_lea.sflag [#allocation5], %s2188_s8  ;;  %s315_s20 = int_to_ptr.vmem [resolvable:$true] %s314_s20 }
  0x4e   : > { %s1907_s18 = scalar_lea.vmem %s315_s20, 256  ;;  %p2468_p6 = pneg %p2193_p2 }
  0x4f   : > { %p1908_p9 = scmp.ne.s32.totalorder %s315_s20, %s1907_s18  ;;  %s2045_s14 = smov [#allocation4]  }
  0x50   : > { %s1912_s17 = sshll.u32 %s2045_s14, 4  ;;  %s1913_s17 = int_to_ptr.vmem [resolvable:$false] %s1912_s17 }
  0x51   : > { %p1910_p3 = pnand %p1908_p9, %p2468_p6  ;;  %s1914_s1 = scalar_lea.vmem %s1913_s17, 512 }
  0x52   : > { %1708 = dma.hbm_to_vmem [thread:$0]  (!%p2154_p11), %s2467_s5, 512, %s285_s10, [#allocation11], %s2466_s21, %s2466_s21, %s2465_s23  }
  0x53   : > { %p1911_p0 = pneg %p1910_p3  ;;  %p1915_p7 = scmp.lt.s32.totalorder %s315_s20, %s1913_s17 }
  0x54   : > { %p1916_p10 = scmp.lt.s32.totalorder %s1914_s1, %s1907_s18 }
  0x56   : > { %p1917_p13 = por %p1916_p10, %p1915_p7 }
  0x58   : > { %p1918_p5 = pnand %p1917_p13, %p1911_p0 }
  0x5a   : > { %1921 = shalt.err (!%p1918_p5)
}
  0x5b   : > { %s2046_s10 = smov 64   ;;  %s2047_s15 = smov 4  }
  0x5c   : > { %s2469_s24 = scalar_lea.hbm %s2421_s0, %s2191_s12  ;;  %s1579_s28 = sadd.s32 192, %s2191_s12 }
  0x5d   : > { %1712 = dma.hbm_to_vmem [thread:$0]  (!%p2193_p2), %s2469_s24, 256, %s315_s20, %s302_s3, %s2046_s10, %s2046_s10, %s2047_s15  }
  0x5e   : > { %s2470_s19 = sshll.u32 %s2188_s8, 2  ;;  %s363_s5 = scalar_lea.hbm %s2423_s2, %s1579_s28 }
  0x5f   : > { %s352_s14 = scalar_lea.vmem [#allocation9], %s2470_s19  ;;  %p2471_p1 = pmov %p2468_p6 }
  0x60   : > { %s365_s1 = sshll.u32 %s352_s14, 4  ;;  %s2048_s26 = smov [#allocation9]   ;;  %s366_s1 = int_to_ptr.vmem [resolvable:$true] %s365_s1 }
  0x61   : > { %s1935_s16 = scalar_lea.vmem %s366_s1, 64  ;;  %s1940_s29 = sshll.u32 %s2048_s26, 4  ;;  %s1941_s29 = int_to_ptr.vmem [resolvable:$false] %s1940_s29 }
  0x62   : > { %p1936_p11 = scmp.ne.s32.totalorder %s366_s1, %s1935_s16  ;;  %s1942_s23 = scalar_lea.vmem %s1941_s29, 128 }
  0x63   : > { %p1943_p6 = scmp.lt.s32.totalorder %s366_s1, %s1941_s29  ;;  %p1944_p3 = scmp.lt.s32.totalorder %s1942_s23, %s1935_s16 }
  0x64   : > { %p1938_p12 = pnand %p1936_p11, %p2471_p1 }
  0x65   : > { %p1945_p0 = por %p1944_p3, %p1943_p6 }
  0x66   : > { %p1939_p9 = pneg %p1938_p12 }
  0x68   : > { %p1946_p7 = pnand %p1945_p0, %p1939_p9 }
  0x6a   : > { %1949 = shalt.err (!%p1946_p7)
}
  0x6b   : > { %1718 = dma.hbm_to_vmem [thread:$0]  (!%p2193_p2), %s363_s5, 64, %s366_s1, %s2212_s7  }
  0x6c   : > { %374 = sbr.rel (%p2145_p8) target bundleno = 924 (0x39c), region = 48  ;;  %s2260_s8 = sand.u32 (!%p2145_p8), 1, %s2022_s25  }
  0x6d   : > { %s1543_s26 = sshll.u32 (!%p2145_p8), %s2260_s8, 4  ;;  %s377_s12 = scalar_lea.sflag (!%p2145_p8), [#allocation5], %s2260_s8 }
  0x6e   : > { %s2264_s29 = scalar_lea.vmem (!%p2145_p8), [#allocation4], %s1543_s26 }
  0x71   : > { %2001 = dma.done.wait (%p2135_p4), %s377_s12, 256  }
  0x72   : > { %2003 = vsyncadd (%p2135_p4), %s377_s12, 4294967040  ;;  %s385_s5 = sand.u32 1, %s2126_s30  }
  0x73   : > { %s386_s7 = scalar_lea.sflag [#allocation8], %s385_s5 }
  0x74   : > { %2005 = dma.done.wait (%p2135_p4), %s386_s7, 128  }
  0x75   : > { %2007 = vsyncadd (%p2135_p4), %s386_s7, 4294967168  ;;  %p2472_p8 = scmp.eq.s32.totalorder %s2126_s30, 0 }
  0x77   : > { %2009 = dma.done.wait (%p2472_p8), [#allocation11], 2432   ;;  %p2473_p2 = pmov %p2472_p8 }
  0x78   : > { %vm475_vm0 = vcmask 60416   ;;  %vm457_vm1 = vcmask 57344   ;;  %v2049_v0 = vmov 0.0   ;;  %v470_v1 = vld [vmem:[%s2264_s29] sm:$0xf]  ;;  %v669_v5 = vld [vmem:[#allocation10 + $0x28] sm:$0xff] }
  0x79   : > { %2011 = vsyncadd (%p2473_p2), [#allocation11], 4294964864  ;;  %465 = vst.msk [vmem:[#allocation2 + $0xd] sm:$0x1] %vm457_vm1, %v2049_v0  ;;  %v471_v2 = vld [vmem:[%s2264_s29 + $0x4] sm:$0xf]  ;;  %1619 = vmatprep.subr.mxu0 %v669_v5 }
  0x7a   : > { %466 = vst.msk [vmem:[#allocation2 + $0x15] sm:$0x1] %vm457_vm1, %v2049_v0  ;;  %458 = vst.msk [vmem:[#allocation2] sm:$0x1] %vm457_vm1, %v2049_v0  ;;  %v472_v3 = vld [vmem:[%s2264_s29 + $0x8] sm:$0xf]  ;;  %1620 = vmatpush3.msra.mxu0 %v669_v5 }
  0x7b   : > { %459 = vst.msk [vmem:[#allocation2 + $0x8] sm:$0x1] %vm457_vm1, %v2049_v0  ;;  %460 = vst.msk [vmem:[#allocation2 + $0x10] sm:$0x1] %vm457_vm1, %v2049_v0  ;;  %v473_v4 = vld [vmem:[%s2264_s29 + $0xc] sm:$0xf] }
  0x7c   : > { %461 = vst.msk [vmem:[#allocation2 + $0x18] sm:$0x1] %vm457_vm1, %v2049_v0  ;;  %462 = vst.msk [vmem:[#allocation2 + $0x20] sm:$0x1] %vm457_vm1, %v2049_v0  ;;  %v668_v6 = vld [vmem:[#allocation10 + $0x20] sm:$0xff]  ;;  %v667_v7 = vld [vmem:[#allocation10 + $0x18] sm:$0xff] }
  0x7d   : > { %463 = vst.msk [vmem:[#allocation2 + $0x28] sm:$0x1] %vm457_vm1, %v2049_v0  ;;  %464 = vst.msk [vmem:[#allocation2 + $0x5] sm:$0x1] %vm457_vm1, %v2049_v0  ;;  %1621 = vmatprep.subr.mxu0 %v668_v6  ;;  %s2050_s30 = smov 8   ;;  %s2051_s9 = smov 16  }
  0x7e   : > { %467 = vst.msk [vmem:[#allocation2 + $0x1d] sm:$0x1] %vm457_vm1, %v2049_v0  ;;  %468 = vst.msk [vmem:[#allocation2 + $0x25] sm:$0x1] %vm457_vm1, %v2049_v0  ;;  %1622 = vmatpush3.msra.mxu0 %v668_v6  ;;  %vm515_vm2 = vcmask 64512   ;;  %v663_v22 = vld [vmem:[#allocation10 + $0x10] sm:$0xff] }
  0x7f   : > { %469 = vst.msk [vmem:[#allocation2 + $0x2d] sm:$0x1] %vm457_vm1, %v2049_v0  ;;  %1623 = vmatprep.subr.mxu0 %v667_v7  ;;  %1628 = vmatprep.subr.mxu1 %v663_v22  ;;  %v662_v25 = vld [vmem:[#allocation10 + $0x8] sm:$0xff]  ;;  %v661_v26 = vld [vmem:[#allocation10] sm:$0xff]  ;;  %vm534_vm3 = vcmask 130112   ;;  %vm553_vm4 = vcmask 195712  }
  0x80   : > { %490 = vst.msk [vmem:[#allocation2 + $0x1] sm:$0xf] %vm475_vm0, %v2049_v0  ;;  %502 = vst.msk [vmem:[#allocation2 + $0x29] sm:$0xf] %vm475_vm0, %v2049_v0  ;;  %1624 = vmatpush3.msra.mxu0 %v667_v7  ;;  %1629 = vmatpush3.msra.mxu1 %v663_v22  ;;  %v838_v27 = vld [vmem:[#allocation10 + $0x40] sm:$0xff]  ;;  %vm670_vm5 = vcmask 195584  }
  0x81   : > { %476 = vst.msk [vmem:[#allocation2 + $0x9] sm:$0xf] %vm475_vm0, %v470_v1  ;;  %477 = vst.msk [vmem:[#allocation2 + $0x11] sm:$0xf] %vm475_vm0, %v471_v2  ;;  %1630 = vmatprep.subr.mxu1 %v662_v25  ;;  %1637 = vmatprep.subr.mxu0 %v838_v27  ;;  %v837_v40 = vld [vmem:[#allocation10 + $0x38] sm:$0xff]  ;;  %v836_v41 = vld [vmem:[#allocation10 + $0x30] sm:$0xff] }
  0x82   : > { %478 = vst.msk [vmem:[#allocation2 + $0x19] sm:$0xf] %vm475_vm0, %v472_v3  ;;  %479 = vst.msk [vmem:[#allocation2 + $0x21] sm:$0xf] %vm475_vm0, %v473_v4  ;;  %1631 = vmatpush3.msra.mxu1 %v662_v25  ;;  %v1064_v44 = vld [vmem:[#allocation10 + $0x70] sm:$0xff]  ;;  %v1063_v51 = vld [vmem:[#allocation10 + $0x68] sm:$0xff] }
  0x83   : > { %1632 = vmatprep.subr.mxu1 %v661_v26  ;;  %v1062_v52 = vld [vmem:[#allocation10 + $0x60] sm:$0xff]  ;;  %v936_v53 = vld [vmem:[#allocation12 + $0x18] sm:$0xff]  ;;  %v935_v54 = vld [vmem:[#allocation12 + $0x10] sm:$0xff]  ;;  %vm944_vm6 = vcmask 261120   ;;  %s1548_s3 = sshll.u32 %s2260_s8, 5  ;;  %vm1048_vm9 = vcmask 257024  }
  0x84   : > { %1633 = vmatpush3.msra.mxu1 %v661_v26  ;;  %v934_v55 = vld [vmem:[#allocation12 + $0x8] sm:$0xff]  ;;  %v933_v56 = vld [vmem:[#allocation12] sm:$0xff]  ;;  %v1555_v2 = vld [vmem:[%s2425_s4] ss:$0 sm:$0xff]  ;;  %s2348_s10 = scalar_lea.vmem [#allocation13], %s1548_s3  ;;  %s1580_s15 = sshll.u32 %s2030_s27, 9 }
  0x85   : > { %1646 = vmatprep.subr.mxu1 %v936_v53  ;;  %v1058_v57 = vld [vmem:[#allocation10 + $0x58] sm:$0xff]  ;;  %s1374_s21 = sshll.u32 %s2348_s10, 4  ;;  %s2474_s19 = sld [smem:[#allocation28_spill]]  ;;  %s2369_s21 = int_to_ptr.vmem [resolvable:$true] %s1374_s21 }
  0x86   : > { %s1358_s27 = scalar_lea.sflag [#allocation6], %s2260_s8  ;;  %s1950_s1 = scalar_lea.vmem %s2369_s21, 512 }
  0x87   : > { %p1951_p4 = scmp.ne.s32.totalorder %s2369_s21, %s1950_s1  ;;  %p2475_p10 = scmp.ne.s32.totalorder %s2460_s22, 0 }
  0x88   : > { %v1788_v8 = vld [vmem:[#allocation2 + $0x9] ss:$8 sps:$4 sm:$0xff]   ;;  %s2052_s18 = smov [#allocation13]  }
  0x89   : > { %v1789_v9 = vld [vmem:[#allocation2 + $0xa] ss:$8 sps:$4 sm:$0xff]   ;;  %581 = vrot.lane.b32.xlu0 %v1788_v8, %s2050_s30  ;;  %v1790_v10 = vld [vmem:[#allocation2 + $0x19] ss:$8 sps:$4 sm:$0xff]   ;;  %p1952_p13 = pnand %p1951_p4, %p2475_p10  ;;  %s1954_s17 = sshll.u32 %s2052_s18, 4  ;;  %s1955_s17 = int_to_ptr.vmem [resolvable:$false] %s1954_s17 }
  0x8a   : > { %599 = vrot.lane.b32.xlu1 %v1789_v9, %s2051_s9  ;;  %v1791_v11 = vld [vmem:[#allocation2 + $0x1a] ss:$8 sps:$4 sm:$0xff]   ;;  %v1800_v16 = vld [vmem:[#allocation2 + $0x8] ss:$8 sps:$4 sm:$0xff]   ;;  %s1956_s23 = scalar_lea.vmem %s1955_s17, 1024  ;;  %p1957_p11 = scmp.lt.s32.totalorder %s2369_s21, %s1955_s17 }
  0x8b   : > { %v1792_v12 = vld [vmem:[#allocation2 + $0x1] ss:$8 sps:$4 sm:$0xff]   ;;  %v1793_v13 = vld [vmem:[#allocation2 + $0x11] ss:$8 sps:$4 sm:$0xff]   ;;  %569 = vst.msk [vmem:[#allocation3 + $0x10] sm:$0xff] %vm515_vm2, %v1800_v16  ;;  %s2367_s14 = scalar_lea.hbm %s2474_s19, %s1580_s15  ;;  %p1953_p5 = pneg %p1952_p13 }
  0x8c   : > { %v1794_v14 = vld [vmem:[#allocation2 + $0x2] ss:$8 sps:$4 sm:$0xff]   ;;  %v1795_v15 = vld [vmem:[#allocation2 + $0x12] ss:$8 sps:$4 sm:$0xff]   ;;  %p1958_p1 = scmp.lt.s32.totalorder %s1956_s23, %s1950_s1 }
  0x8d   : > { %583 = vrot.lane.b32.xlu0 %v1790_v10, %s2050_s30  ;;  %v1796_v17 = vld [vmem:[#allocation2 + $0x11] ss:$8 sps:$4 sm:$0xff]   ;;  %v1797_v19 = vld [vmem:[#allocation2 + $0x21] ss:$8 sps:$4 sm:$0xff]  }
  0x8e   : > { %601 = vrot.lane.b32.xlu1 %v1791_v11, %s2051_s9  ;;  %v1801_v18 = vld [vmem:[#allocation2 + $0x18] ss:$8 sps:$4 sm:$0xff]   ;;  %p1959_p12 = por %p1958_p1, %p1957_p11 }
  0x8f   : > { %v1802_v20 = vld [vmem:[#allocation2] ss:$8 sps:$4 sm:$0xff]   ;;  %570 = vst.msk [vmem:[#allocation3 + $0x18] sm:$0xff] %vm515_vm2, %v1801_v18  ;;  %v1803_v21 = vld [vmem:[#allocation2 + $0x10] ss:$8 sps:$4 sm:$0xff]  }
  0x90   : > { %516 = vst.msk [vmem:[#allocation3] sm:$0xff] %vm515_vm2, %v1802_v20  ;;  %v1804_v23 = vld [vmem:[#allocation2 + $0x10] ss:$8 sps:$4 sm:$0xff]   ;;  %517 = vst.msk [vmem:[#allocation3 + $0x8] sm:$0xff] %vm515_vm2, %v1803_v21  ;;  %v1805_v24 = vld [vmem:[#allocation2 + $0x20] ss:$8 sps:$4 sm:$0xff]   ;;  %p1960_p9 = pnand %p1959_p12, %p1953_p5 }
  0x91   : > { %528 = vrot.lane.b32.xlu0 %v1792_v12, %s2050_s30  ;;  %621 = vst.msk [vmem:[#allocation3 + $0x20] sm:$0xff] %vm515_vm2, %v1804_v23  ;;  %v1798_v28 = vld [vmem:[#allocation2 + $0x12] ss:$8 sps:$4 sm:$0xff]   ;;  %622 = vst.msk [vmem:[#allocation3 + $0x28] sm:$0xff] %vm515_vm2, %v1805_v24  ;;  %v1799_v29 = vld [vmem:[#allocation2 + $0x22] ss:$8 sps:$4 sm:$0xff]  }
  0x92   : > { %530 = vrot.lane.b32.xlu1 %v1793_v13, %s2050_s30  ;;  %v1057_v9 = vld [vmem:[#allocation10 + $0x50] sm:$0xff]  ;;  %v1056_v10 = vld [vmem:[#allocation10 + $0x48] sm:$0xff] }
  0x93   : > { %v1556_v11 = vld [vmem:[%s2427_s6] ss:$0 sm:$0xff] }
  0x95   : > { %547 = vrot.lane.b32.xlu0 %v1794_v14, %s2051_s9 }
  0x96   : > { %549 = vrot.lane.b32.xlu1 %v1795_v15, %s2051_s9 }
  0x99   : > { %633 = vrot.lane.b32.xlu0 %v1796_v17, %s2050_s30 }
  0x9a   : > { %635 = vrot.lane.b32.xlu1 %v1797_v19, %s2050_s30 }
  0x9d   : > { %651 = vrot.lane.b32.xlu0 %v1798_v28, %s2051_s9 }
  0x9e   : > { %653 = vrot.lane.b32.xlu1 %v1799_v29, %s2051_s9 }
  0xfb   : > { %v582_v30 = vpop.permute.xlu0 %581 }
  0xfc   : > { %587 = vst.msk [vmem:[#allocation3 + $0x10] sm:$0xff] %vm534_vm3, %v582_v30  ;;  %v600_v31 = vpop.permute.xlu1 %599 }
  0xfd   : > { %605 = vst.msk [vmem:[#allocation3 + $0x10] sm:$0xff] %vm553_vm4, %v600_v31 }
  0xff   : > { %v584_v32 = vpop.permute.xlu0 %583 }
 0x100   : > { %588 = vst.msk [vmem:[#allocation3 + $0x18] sm:$0xff] %vm534_vm3, %v584_v32  ;;  %v602_v33 = vpop.permute.xlu1 %601 }
 0x101   : > { %606 = vst.msk [vmem:[#allocation3 + $0x18] sm:$0xff] %vm553_vm4, %v602_v33 }
 0x103   : > { %v529_v34 = vpop.permute.xlu0 %528 }
 0x104   : > { %535 = vst.msk [vmem:[#allocation3] sm:$0xff] %vm534_vm3, %v529_v34  ;;  %v531_v35 = vpop.permute.xlu1 %530  ;;  %v2312_v36 = vld [vmem:[#allocation3 + $0x10] sm:$0xff] }
 0x105   : > { %536 = vst.msk [vmem:[#allocation3 + $0x8] sm:$0xff] %vm534_vm3, %v531_v35  ;;  %1625 = vmatprep.mubr.msk.f32.mxu0 %vm670_vm5, %v2312_v36 }
 0x107   : > { %v548_v37 = vpop.permute.xlu0 %547 }
 0x108   : > { %554 = vst.msk [vmem:[#allocation3] sm:$0xff] %vm553_vm4, %v548_v37  ;;  %v550_v38 = vpop.permute.xlu1 %549  ;;  %v2318_v39 = vld [vmem:[#allocation3 + $0x18] sm:$0xff] }
 0x109   : > { %555 = vst.msk [vmem:[#allocation3 + $0x8] sm:$0xff] %vm553_vm4, %v550_v38  ;;  %1626 = vmatmul.mubr.msk.f32.vlgmr.msra.gmra.mxu0 %vm670_vm5, %v2318_v39 }
 0x10a   : > { %1638 = vmatpush3.msra.mxu0 %v838_v27 }
 0x10b   : > { %v634_v42 = vpop.permute.xlu0 %633  ;;  %1639 = vmatprep.subr.mxu0 %v837_v40 }
 0x10c   : > { %639 = vst.msk [vmem:[#allocation3 + $0x20] sm:$0xff] %vm534_vm3, %v634_v42  ;;  %v636_v43 = vpop.permute.xlu1 %635  ;;  %1640 = vmatpush3.msra.mxu0 %v837_v40 }
 0x10d   : > { %640 = vst.msk [vmem:[#allocation3 + $0x28] sm:$0xff] %vm534_vm3, %v636_v43  ;;  %1641 = vmatprep.subr.mxu0 %v836_v41 }
 0x10e   : > { %1642 = vmatpush3.msra.mxu0 %v836_v41 }
 0x10f   : > { %v652_v45 = vpop.permute.xlu0 %651  ;;  %v659_v46 = vld [vmem:[#allocation3] sm:$0xff]  ;;  %1657 = vmatprep.subr.mxu0 %v1064_v44 }
 0x110   : > { %657 = vst.msk [vmem:[#allocation3 + $0x20] sm:$0xff] %vm553_vm4, %v652_v45  ;;  %v654_v47 = vpop.permute.xlu1 %653  ;;  %1634 = vmatprep.mubr.msk.f32.mxu1 %vm670_vm5, %v659_v46  ;;  %v660_v48 = vld [vmem:[#allocation3 + $0x8] sm:$0xff] }
 0x111   : > { %658 = vst.msk [vmem:[#allocation3 + $0x28] sm:$0xff] %vm553_vm4, %v654_v47  ;;  %1635 = vmatmul.mubr.msk.f32.vlgmr.msra.gmra.mxu1 %vm670_vm5, %v660_v48 }
 0x112   : > { %1647 = vmatpush3.msra.mxu1 %v936_v53 }
 0x113   : > { %1648 = vmatprep.subr.mxu1 %v935_v54 }
 0x114   : > { %1649 = vmatpush3.msra.mxu1 %v935_v54 }
 0x115   : > { %1650 = vmatprep.subr.mxu1 %v934_v55 }
 0x116   : > { %1651 = vmatpush3.msra.mxu1 %v934_v55 }
 0x117   : > { %v833_v49 = vld [vmem:[#allocation3 + $0x20] sm:$0xff]  ;;  %1652 = vmatprep.subr.mxu1 %v933_v56 }
 0x118   : > { %1643 = vmatprep.mubr.msk.f32.mxu0 %vm670_vm5, %v833_v49  ;;  %v834_v50 = vld [vmem:[#allocation3 + $0x28] sm:$0xff]  ;;  %1653 = vmatpush3.msra.mxu1 %v933_v56 }
 0x119   : > { %1644 = vmatmul.mubr.msk.f32.vlgmr.msra.gmra.mxu0 %vm670_vm5, %v834_v50  ;;  %1666 = vmatprep.subr.mxu1 %v1058_v57 }
 0x11a   : > { %1658 = vmatpush3.msra.mxu0 %v1064_v44  ;;  %1663 = vmatprep.mubr.msk.f32.mxu0 %vm670_vm5, %v833_v49 }
 0x11b   : > { %1659 = vmatprep.subr.mxu0 %v1063_v51 }
 0x11c   : > { %1660 = vmatpush3.msra.mxu0 %v1063_v51 }
 0x11d   : > { %1661 = vmatprep.subr.mxu0 %v1062_v52 }
 0x11e   : > { %1662 = vmatpush3.msra.mxu0 %v1062_v52 }
 0x11f   : > { %1664 = vmatmul.mubr.msk.f32.vlgmr.msra.gmra.mxu0 %vm670_vm5, %v834_v50  ;;  %1675 = vmatprep.subr.mxu0 %v936_v53 }
 0x120   : > { %1676 = vmatpush3.msra.mxu0 %v936_v53 }
 0x121   : > { %1677 = vmatprep.subr.mxu0 %v935_v54 }
 0x122   : > { %1678 = vmatpush3.msra.mxu0 %v935_v54 }
 0x123   : > { %1679 = vmatprep.subr.mxu0 %v934_v55 }
 0x124   : > { %1680 = vmatpush3.msra.mxu0 %v934_v55 }
 0x125   : > { %1681 = vmatprep.subr.mxu0 %v933_v56 }
 0x126   : > { %1682 = vmatpush3.msra.mxu0 %v933_v56 }
 0x1c9   : > { %v1627_v58 = vpop.f32.mrf.mxu0 }
 0x1cb   : > { %v743_v60 = vpop.f32.mrf.mxu0 }
 0x1d1   : > { %v1636_v59 = vpop.f32.mrf.mxu1 }
 0x1d2   : > { %v830_v62 = vadd.f32 %v1636_v59, %v1627_v58 }
 0x1d3   : > { %v824_v61 = vpop.f32.mrf.mxu1 }
 0x1d4   : > { %v825_v0 = vadd.f32 %v824_v61, %v743_v60 }
 0x1d9   : > { %v1645_v63 = vpop.f32.mrf.mxu0 }
 0x1da   : > { %v921_v1 = vadd.f32 %v1645_v63, %v830_v62 }
 0x1db   : > { %v911_v3 = vpop.f32.mrf.mxu0 }
 0x1dc   : > { %v920_v4 = vadd.f32 %v911_v3, %v825_v0  ;;  %v930_v5 = vadd.f32 %v1555_v2, %v921_v1 }
 0x1de   : > { %v929_v6 = vadd.f32 %v1555_v2, %v920_v4  ;;  %v932_v8 = vmul.f32 %v930_v5, %v930_v5 }
 0x1df   : > { %v1665_v15 = vpop.f32.mrf.mxu0 }
 0x1e0   : > { %v931_v7 = vmul.f32 %v929_v6, %v929_v6 }
 0x1e1   : > { %v1137_v19 = vpop.f32.mrf.mxu0 }
 0x1e2   : > { %1654 = vmatprep.mubr.msk.f32.mxu1 %vm944_vm6, %v931_v7 }
 0x1e3   : > { %1655 = vmatmul.mubr.msk.f32.vlgmr.msra.gmra.mxu1 %vm944_vm6, %v932_v8 }
 0x1e4   : > { %1667 = vmatpush3.msra.mxu1 %v1058_v57  ;;  %1672 = vmatprep.mubr.msk.f32.mxu1 %vm670_vm5, %v2312_v36 }
 0x1e5   : > { %1668 = vmatprep.subr.mxu1 %v1057_v9 }
 0x1e6   : > { %1669 = vmatpush3.msra.mxu1 %v1057_v9 }
 0x1e7   : > { %1670 = vmatprep.subr.mxu1 %v1056_v10 }
 0x1e8   : > { %1671 = vmatpush3.msra.mxu1 %v1056_v10 }
 0x1e9   : > { %1673 = vmatmul.mubr.msk.f32.vlgmr.msra.gmra.mxu1 %vm670_vm5, %v2318_v39 }
 0x2a3   : > { %v1656_v12 = vpop.f32.mrf.mxu1 }
 0x2a4   : > { %v1023_v13 = vadd.f32 %v1656_v12, %v1556_v11 }
 0x2a5   : > { %v1017_v14 = vpop.f32.mrf.mxu1 }
 0x2a6   : > { %1806 = vrsqrt.f32 %v1023_v13  ;;  %v1018_v16 = vadd.f32 %v1556_v11, %v1017_v14  ;;  %vm1035_vm7 = vcmp.eq.f32.partialorder %v1023_v13, inf  ;;  %v1038_v28 = vand.u32 2147483648, %v1023_v13 }
 0x2a7   : > { %vm1037_vm8 = vcmp.eq.f32.partialorder %v1023_v13, 0.0 }
 0x2a8   : > { %1808 = vrsqrt.f32 %v1018_v16  ;;  %vm1028_vm10 = vcmp.eq.f32.partialorder %v1018_v16, inf  ;;  %v1031_v34 = vand.u32 2147483648, %v1018_v16  ;;  %vm1030_vm11 = vcmp.eq.f32.partialorder %v1018_v16, 0.0 }
 0x2a9   : > { %v1674_v17 = vpop.f32.mrf.mxu1 }
 0x2aa   : > { %v1224_v18 = vadd.f32 %v1674_v17, %v1665_v15 }
 0x2ab   : > { %v1218_v20 = vpop.f32.mrf.mxu1 }
 0x2ac   : > { %v1219_v21 = vadd.f32 %v1218_v20, %v1137_v19  ;;  %v1235_v22 = vadd.f32 %v1555_v2, %v1224_v18 }
 0x2ae   : > { %v1234_v23 = vadd.f32 %v1555_v2, %v1219_v21  ;;  %v1237_v25 = vmul.f32 %v1235_v22, %v1235_v22 }
 0x2b0   : > { %v1236_v24 = vmul.f32 %v1234_v23, %v1234_v23 }
 0x2b2   : > { %1683 = vmatprep.mubr.msk.f32.mxu0 %vm944_vm6, %v1236_v24 }
 0x2b3   : > { %v1807_v26 = vpop.eup %1806  ;;  %1684 = vmatmul.mubr.msk.f32.vlgmr.msra.gmra.mxu0 %vm944_vm6, %v1237_v25 }
 0x2b4   : > { %v1034_v27 = vmul.f32 %v1807_v26, %v1023_v13 }
 0x2b5   : > { %v1809_v29 = vpop.eup %1808 }
 0x2b6   : > { %v1036_v30 = vsel %vm1035_vm7, %v1023_v13, %v1034_v27  ;;  %v1027_v32 = vmul.f32 %v1809_v29, %v1018_v16 }
 0x2b7   : > { %v1039_v31 = vsel %vm1037_vm8, %v1038_v28, %v1036_v30 }
 0x2b8   : > { %v1041_v33 = vmul.f32 %v1039_v31, %v930_v5  ;;  %v1029_v35 = vsel %vm1028_vm10, %v1018_v16, %v1027_v32 }
 0x2b9   : > { %v1032_v37 = vsel %vm1030_vm11, %v1031_v34, %v1029_v35 }
 0x2ba   : > { %v1045_v36 = vcombine.high %v1041_v33, %v1041_v33  ;;  %1051 = vst.msk [vmem:[%s2348_s10 + $0x10] sm:$0xf] %vm1048_vm9, %v1041_v33  ;;  %v1040_v38 = vmul.f32 %v1032_v37, %v929_v6 }
 0x2bc   : > { %1052 = vst.msk [vmem:[%s2348_s10 + $0x18] sm:$0xf] %vm1048_vm9, %v1045_v36  ;;  %v1044_v39 = vcombine.high %v1040_v38, %v1040_v38  ;;  %1049 = vst.msk [vmem:[%s2348_s10] sm:$0xf] %vm1048_vm9, %v1040_v38 }
 0x2be   : > { %1050 = vst.msk [vmem:[%s2348_s10 + $0x8] sm:$0xf] %vm1048_vm9, %v1044_v39 }
 0x373   : > { %v1685_v40 = vpop.f32.mrf.mxu0 }
 0x374   : > { %v1327_v41 = vadd.f32 %v1685_v40, %v1556_v11 }
 0x375   : > { %v1321_v42 = vpop.f32.mrf.mxu0 }
 0x376   : > { %1810 = vrsqrt.f32 %v1327_v41  ;;  %v1322_v43 = vadd.f32 %v1556_v11, %v1321_v42  ;;  %vm1339_vm12 = vcmp.eq.f32.partialorder %v1327_v41, inf  ;;  %v1342_v46 = vand.u32 2147483648, %v1327_v41 }
 0x377   : > { %vm1341_vm13 = vcmp.eq.f32.partialorder %v1327_v41, 0.0 }
 0x378   : > { %1812 = vrsqrt.f32 %v1322_v43  ;;  %vm1332_vm14 = vcmp.eq.f32.partialorder %v1322_v43, inf  ;;  %v1335_v52 = vand.u32 2147483648, %v1322_v43  ;;  %vm1334_vm15 = vcmp.eq.f32.partialorder %v1322_v43, 0.0 }
 0x383   : > { %v1811_v44 = vpop.eup %1810 }
 0x384   : > { %v1338_v45 = vmul.f32 %v1811_v44, %v1327_v41 }
 0x385   : > { %v1813_v47 = vpop.eup %1812 }
 0x386   : > { %v1340_v48 = vsel %vm1339_vm12, %v1327_v41, %v1338_v45  ;;  %v1331_v50 = vmul.f32 %v1813_v47, %v1322_v43 }
 0x387   : > { %v1343_v49 = vsel %vm1341_vm13, %v1342_v46, %v1340_v48 }
 0x388   : > { %v1345_v51 = vmul.f32 %v1343_v49, %v1235_v22  ;;  %v1333_v53 = vsel %vm1332_vm14, %v1322_v43, %v1331_v50 }
 0x389   : > { %v1336_v55 = vsel %vm1334_vm15, %v1335_v52, %v1333_v53 }
 0x38a   : > { %v1349_v54 = vcombine.high %v1345_v51, %v1345_v51  ;;  %1569 = vst.msk [vmem:[%s2348_s10 + $0x14] sm:$0xf] %vm1048_vm9, %v1345_v51  ;;  %v1344_v56 = vmul.f32 %v1336_v55, %v1234_v23 }
 0x38c   : > { %1570 = vst.msk [vmem:[%s2348_s10 + $0x1c] sm:$0xf] %vm1048_vm9, %v1349_v54  ;;  %v1348_v57 = vcombine.high %v1344_v56, %v1344_v56  ;;  %1567 = vst.msk [vmem:[%s2348_s10 + $0x4] sm:$0xf] %vm1048_vm9, %v1344_v56 }
 0x38e   : > { %1568 = vst.msk [vmem:[%s2348_s10 + $0xc] sm:$0xf] %vm1048_vm9, %v1348_v57 }
 0x38f   : > { %1963 = shalt.err (!%p1960_p9)
}
 0x390   : > { %s1964_s26 = scalar_lea.hbm %s2367_s14, 512  ;;  %s1968_s5 = scalar_lea.hbm %s2474_s19, 1024 }
 0x391   : > { %p1965_p6 = scmp.ne.s32.totalorder %s2367_s14, %s1964_s26  ;;  %p1969_p7 = scmp.lt.s32.totalorder %s2367_s14, %s2474_s19 }
 0x392   : > { %p1970_p8 = scmp.lt.s32.totalorder %s1968_s5, %s1964_s26 }
 0x393   : > { %p1966_p3 = pnand %p1965_p6, %p2475_p10 }
 0x394   : > { %p1971_p2 = por %p1970_p8, %p1969_p7 }
 0x395   : > { %p1967_p0 = pneg %p1966_p3 }
 0x397   : > { %p1972_p4 = pnand %p1971_p2, %p1967_p0 }
 0x399   : > { %1975 = shalt.err (!%p1972_p4)
}
 0x39a   : > { %s2053_s9 = smov 64   ;;  %s2054_s11 = smov 4  }
 0x39b   : > { %1700 = dma.vmem_to_hbm [thread:$0]  (%p2475_p10), %s2369_s21, 512, %s2367_s14, %s1358_s27, %s2053_s9, %s2053_s9, %s2054_s11  }
 0x39c PF: > { %s2476_s13 = sld [smem:[#allocation18_spill]] }
 0x39d   : > { %s2477_s16 = sld [smem:[#allocation22_spill]] }
 0x39e   : > { %s2478_s20 = sld [smem:[#allocation21_spill]] }
 0x3a2   : > { %s1389_s3 = sand.u32 1, %s2476_s13  }
 0x3a3   : > { %p2479_p13 = scmp.ne.s32.totalorder %s2477_s16, 0  ;;  %s1390_s10 = scalar_lea.sflag [#allocation6], %s1389_s3 }
 0x3a4   : > { %p2480_p5 = scmp.ge.s32.totalorder %s2478_s20, 2 }
 0x3a6   : > { %p1720_p11 = pnand %p2480_p5, %p2479_p13 }
 0x3a8   : > { %p1721_p1 = pneg %p1720_p11 }
 0x3aa   : > { %2013 = dma.done.wait (%p1721_p1), %s1390_s10, 512  }
 0x3ab   : > { %2015 = vsyncadd (%p1721_p1), %s1390_s10, 4294966784  ;;  %s27_s29 = sadd.s32 1, %s2478_s20   ;;  %s2481_s15 = sld [smem:[#allocation19_spill]] }
 0x3ac   : > { %p24_p12 = scmp.ge.s32.totalorder %s27_s29, 4   ;;  %s2482_s26 = sld [smem:[#allocation24_spill]] }
 0x3ad   : > { %s2483_s27 = sld [smem:[#allocation20_spill]]  ;;  %s2485_s24 = smov %s2022_s25 }
 0x3ae   : > { %s2484_s28 = sld [smem:[#allocation23_spill]]  ;;  %26 = sbr.rel (!%p24_p12) target bundleno = 14 (0xe), region = 152 }
 0x3b1   : > { %s2486_s25 = smov %s2481_s15 }
 0x3b3   :  { %1395 = vsyncpa [#allocation5], 1 }
 0x3b4   :  { %1397 = vsyncpa [#allocation5 + $0x1], 1 }
 0x3b5   :  { %1398 = vsyncpa [#allocation8], 1 }
 0x3b6   :  { %1400 = vsyncpa [#allocation8 + $0x1], 1 }
 0x3b7   :  { %1401 = vsyncpa [#allocation11], 1 }
 0x3b8   :  { %1402 = vsyncpa [#allocation6], 1 }
 0x3b9   :  { %1404 = vsyncpa [#allocation6 + $0x1], 1 }

</bundles_post_ra>
